<compile_context>
chip_gen: v6e
topology: v6e:2x2x1
jax: 0.10.0
libtpu: 0.0.40
codegen_flags: <defaults>
</compile_context>

<pallas_src>
import functools

import jax
import jax.numpy as jnp
from jax.experimental import pallas as pl
from jax.experimental.pallas import tpu as pltpu


# ------------------------------- helpers ----------------------------------- #
def _round_up(n, m):
    return ((n + m - 1) // m) * m


def _act(x):
    # 'x+sin(x)^2' nonlinearity from choose_nonlinearity (sin -> EUP slot).
    s = jnp.sin(x)
    return x + s * s


# -------------------------------- kernel ------------------------------------ #
def interp_resnet_kernel(n_res, nb_hidden_layers, alpha,
                         x_ref, w_ref, b_ref, o_ref):
    """Whole forward in one grid step per batch tile.

    w_ref: (M, P, P) packed, lane-padded weights (static per-matrix index).
    b_ref: (M, 1, P) packed, lane-padded biases.
    Packing order: [resblock occ. 0, resblock occ. 1, ..., main MLP], each as
    [w1, wh_0..wh_{nbh-1}, w2].
    """
    stride = nb_hidden_layers + 2

    def mlp(h, base):
        h = _act(jnp.dot(h, w_ref[base],
                         preferred_element_type=jnp.float32) + b_ref[base])
        for l in range(nb_hidden_layers):
            h = _act(jnp.dot(h, w_ref[base + 1 + l],
                             preferred_element_type=jnp.float32)
                     + b_ref[base + 1 + l])
        return (jnp.dot(h, w_ref[base + 1 + nb_hidden_layers],
                        preferred_element_type=jnp.float32)
                + b_ref[base + 1 + nb_hidden_layers])

    y = x_ref[...]
    # Residual blocks first (Interp_ResNet.forward), static Python loop
    # (static trip count == len(resblock_list), fully unrolled for the LLO
    # scheduler).
    for j in range(n_res):
        y = mlp(y, j * stride) * alpha + y
    # Main MLP last.
    o_ref[...] = mlp(y, n_res * stride)


# --------------------------- host-side packing ------------------------------ #
def pack_params(params, resblock_list, nb_hidden_layers, feat_pad):
    """Gather ONLY the residual blocks named in resblock_list plus the main
    MLP into two contiguous lane-padded buffers (2 DMAs total)."""
    P = feat_pad

    def pad_w(w):
        return jnp.pad(w, ((0, P - w.shape[0]), (0, P - w.shape[1])))

    def pad_b(b):
        return jnp.pad(b, ((0, 0), (0, P - b.shape[1])))

    ws, bs = [], []

    def add_mlp(p):
        ws.append(pad_w(p["w1"])); bs.append(pad_b(p["b1"]))
        for l in range(nb_hidden_layers):
            ws.append(pad_w(p["wh"][l])); bs.append(pad_b(p["bh"][l]))
        ws.append(pad_w(p["w2"])); bs.append(pad_b(p["b2"]))

    for i in resblock_list:            # used blocks only, in call order
        add_mlp(params["res"][i])
    add_mlp(params["mlp"])

    return jnp.stack(ws), jnp.stack(bs)


# ------------------------------ host wrapper -------------------------------- #
def interp_resnet_forward(x, params, resblock_list, nb_hidden_layers,
                          alpha=1.0):
    input_dim = params["mlp"]["w1"].shape[0]
    hidden_dim = params["mlp"]["w1"].shape[1]
    output_dim = params["mlp"]["w2"].shape[1]
    P = _round_up(max(input_dim, hidden_dim, output_dim), 128)

    w_packed, b_packed = pack_params(params, resblock_list,
                                     nb_hidden_layers, P)

    # Batch padding / tiling: sublane-aligned tile, grid over batch.
    B = x.shape[0]
    if _round_up(B, 8) <= 128:
        bt = _round_up(B, 8)           # single grid step for small batches
    else:
        bt = 128                       # lane/sublane-friendly MXU tile
    Bp = _round_up(B, bt)
    xp = jnp.pad(x.astype(jnp.float32), ((0, Bp - B), (0, P - input_dim)))

    kernel = functools.partial(interp_resnet_kernel, len(resblock_list),
                               nb_hidden_layers, float(alpha))

    out = pl.pallas_call(
        kernel,
        out_shape=jax.ShapeDtypeStruct((Bp, P), jnp.float32),
        grid_spec=pltpu.PrefetchScalarGridSpec(
            num_scalar_prefetch=0,
            grid=(Bp // bt,),
            in_specs=[
                # activations: tiled over batch
                pl.BlockSpec((bt, P), lambda i: (i, 0)),
                # packed params: constant index_map -> single DMA, resident
                # in VMEM across all grid steps.
                pl.BlockSpec(w_packed.shape, lambda i: (0, 0, 0)),
                pl.BlockSpec(b_packed.shape, lambda i: (0, 0, 0)),
            ],
            out_specs=pl.BlockSpec((bt, P), lambda i: (i, 0)),
        ),
        compiler_params=pltpu.CompilerParams(
            dimension_semantics=("parallel",)),  # megacore-shardable batch axis
        # NOTE: footprint is <2 MiB; if hidden_dim / num_blocks are scaled up,
        # set vmem_limit_bytes here and budget against 64 MiB on v7x.
    )(xp, w_packed, b_packed)

    return out[:B, :output_dim]


# ------------------------- deterministic parameters ------------------------- #
def init_params(key, *, num_blocks, input_dim, hidden_dim, nb_hidden_layers,
                output_dim):
    scale = 0.1

    def mlp_params(k, in_dim, out_dim):
        ks = jax.random.split(k, 6)

        def rnd(kk, shape):
            return (scale * jax.random.normal(kk, shape)).astype(jnp.float32)

        return {
            "w1": rnd(ks[0], (in_dim, hidden_dim)),
            "b1": rnd(ks[1], (1, hidden_dim)),
            "wh": rnd(ks[2], (nb_hidden_layers, hidden_dim, hidden_dim)),
            "bh": rnd(ks[3], (nb_hidden_layers, 1, hidden_dim)),
            "w2": rnd(ks[4], (hidden_dim, out_dim)),
            "b2": rnd(ks[5], (1, out_dim)),
        }

    keys = jax.random.split(key, num_blocks + 1)
    res = [mlp_params(keys[b], input_dim, input_dim) for b in range(num_blocks)]
    mlp = mlp_params(keys[num_blocks], input_dim, output_dim)
    return {"res": res, "mlp": mlp}


# ----------------------------- pure-JAX reference ---------------------------- #
def reference_forward(x, params, resblock_list, nb_hidden_layers, alpha=1.0):
    def mlp(h, p):
        h = _act(h @ p["w1"] + p["b1"])
        for l in range(nb_hidden_layers):
            h = _act(h @ p["wh"][l] + p["bh"][l])
        return h @ p["w2"] + p["b2"]

    y = x
    for i in resblock_list:
        y = mlp(y, params["res"][i]) * alpha + y
    return mlp(y, params["mlp"])


if __name__ == "__main__":
    # Interp_ResNet defaults, small batch.
    num_blocks = 4
    input_dim = 4
    hidden_dim = 25
    nb_hidden_layers = 2
    output_dim = 1
    resblock_list = [0, 2]   # static list of active residual blocks
    batch = 8

    key = jax.random.PRNGKey(0)
    k_x, k_p = jax.random.split(key)
    x = jax.random.normal(k_x, (batch, input_dim), dtype=jnp.float32)
    params = init_params(k_p, num_blocks=num_blocks, input_dim=input_dim,
                         hidden_dim=hidden_dim,
                         nb_hidden_layers=nb_hidden_layers,
                         output_dim=output_dim)

    out = interp_resnet_forward(x, params, resblock_list, nb_hidden_layers)
    out = jax.block_until_ready(out)

    ref = reference_forward(x, params, resblock_list, nb_hidden_layers)
    assert out.shape == (batch, output_dim)
    assert jnp.allclose(out, ref, atol=1e-4, rtol=1e-4), "mismatch vs reference"

    print("KERNEL_OK")
</pallas_src>

<mosaic_0001>
module attributes {stable_mosaic.version = 11 : i64} {
  func.func @interp_resnet_kernel(%arg0: i32, %arg1: memref<8x128xf32, #tpu.memory_space<vmem>>, %arg2: memref<12x128x128xf32, #tpu.memory_space<vmem>>, %arg3: memref<12x1x128xf32, #tpu.memory_space<vmem>>, %arg4: memref<8x128xf32, #tpu.memory_space<vmem>>) attributes {dimension_semantics = [#tpu.dimension_semantics<parallel>], iteration_bounds = array<i64: 1>, scalar_prefetch = 0 : i64, scratch_operands = 0 : i64, tpu.core_type = #tpu.core_type<tc>, window_params = [{transform_indices = @transform_0, window_bounds = array<i64: 8, 128>}, {pipeline_mode = #tpu.pipeline_mode<synchronous>, transform_indices = @transform_1, window_bounds = array<i64: 12, 128, 128>}, {pipeline_mode = #tpu.pipeline_mode<synchronous>, transform_indices = @transform_2, window_bounds = array<i64: 12, 1, 128>}, {transform_indices = @transform_3, window_bounds = array<i64: 8, 128>}]} {
    %c0 = arith.constant 0 : index
    %c0_0 = arith.constant 0 : index
    %0 = vector.load %arg1[%c0, %c0_0] : memref<8x128xf32, #tpu.memory_space<vmem>>, vector<8x128xf32>
    %c0_1 = arith.constant 0 : index
    %c0_2 = arith.constant 0 : index
    %c0_3 = arith.constant 0 : index
    %1 = vector.load %arg2[%c0_1, %c0_2, %c0_3] : memref<12x128x128xf32, #tpu.memory_space<vmem>>, vector<1x128x128xf32>
    %2 = vector.shape_cast %1 : vector<1x128x128xf32> to vector<128x128xf32>
    %cst = arith.constant dense<0.000000e+00> : vector<8x128xf32>
    %3 = tpu.matmul %0, %2, %cst {dimension_numbers = #tpu.dot_dimension_numbers<[1], [0], [0], [1], [0, 0, 1, 1], [], []>} : vector<8x128xf32>, vector<128x128xf32>, vector<8x128xf32> -> vector<8x128xf32>
    %c0_4 = arith.constant 0 : index
    %c0_5 = arith.constant 0 : index
    %c0_6 = arith.constant 0 : index
    %4 = vector.load %arg3[%c0_4, %c0_5, %c0_6] : memref<12x1x128xf32, #tpu.memory_space<vmem>>, vector<1x1x128xf32>
    %5 = vector.shape_cast %4 : vector<1x1x128xf32> to vector<1x128xf32>
    %6 = vector.broadcast %5 : vector<1x128xf32> to vector<8x128xf32>
    %7 = arith.addf %3, %6 : vector<8x128xf32>
    %8 = math.sin %7 : vector<8x128xf32>
    %9 = arith.mulf %8, %8 : vector<8x128xf32>
    %10 = arith.addf %7, %9 : vector<8x128xf32>
    %c1 = arith.constant 1 : index
    %c0_7 = arith.constant 0 : index
    %c0_8 = arith.constant 0 : index
    %11 = vector.load %arg2[%c1, %c0_7, %c0_8] : memref<12x128x128xf32, #tpu.memory_space<vmem>>, vector<1x128x128xf32>
    %12 = vector.shape_cast %11 : vector<1x128x128xf32> to vector<128x128xf32>
    %cst_9 = arith.constant dense<0.000000e+00> : vector<8x128xf32>
    %13 = tpu.matmul %10, %12, %cst_9 {dimension_numbers = #tpu.dot_dimension_numbers<[1], [0], [0], [1], [0, 0, 1, 1], [], []>} : vector<8x128xf32>, vector<128x128xf32>, vector<8x128xf32> -> vector<8x128xf32>
    %c1_10 = arith.constant 1 : index
    %c0_11 = arith.constant 0 : index
    %c0_12 = arith.constant 0 : index
    %14 = vector.load %arg3[%c1_10, %c0_11, %c0_12] : memref<12x1x128xf32, #tpu.memory_space<vmem>>, vector<1x1x128xf32>
    %15 = vector.shape_cast %14 : vector<1x1x128xf32> to vector<1x128xf32>
    %16 = vector.broadcast %15 : vector<1x128xf32> to vector<8x128xf32>
    %17 = arith.addf %13, %16 : vector<8x128xf32>
    %18 = math.sin %17 : vector<8x128xf32>
    %19 = arith.mulf %18, %18 : vector<8x128xf32>
    %20 = arith.addf %17, %19 : vector<8x128xf32>
    %c2 = arith.constant 2 : index
    %c0_13 = arith.constant 0 : index
    %c0_14 = arith.constant 0 : index
    %21 = vector.load %arg2[%c2, %c0_13, %c0_14] : memref<12x128x128xf32, #tpu.memory_space<vmem>>, vector<1x128x128xf32>
    %22 = vector.shape_cast %21 : vector<1x128x128xf32> to vector<128x128xf32>
    %cst_15 = arith.constant dense<0.000000e+00> : vector<8x128xf32>
    %23 = tpu.matmul %20, %22, %cst_15 {dimension_numbers = #tpu.dot_dimension_numbers<[1], [0], [0], [1], [0, 0, 1, 1], [], []>} : vector<8x128xf32>, vector<128x128xf32>, vector<8x128xf32> -> vector<8x128xf32>
    %c2_16 = arith.constant 2 : index
    %c0_17 = arith.constant 0 : index
    %c0_18 = arith.constant 0 : index
    %24 = vector.load %arg3[%c2_16, %c0_17, %c0_18] : memref<12x1x128xf32, #tpu.memory_space<vmem>>, vector<1x1x128xf32>
    %25 = vector.shape_cast %24 : vector<1x1x128xf32> to vector<1x128xf32>
    %26 = vector.broadcast %25 : vector<1x128xf32> to vector<8x128xf32>
    %27 = arith.addf %23, %26 : vector<8x128xf32>
    %28 = math.sin %27 : vector<8x128xf32>
    %29 = arith.mulf %28, %28 : vector<8x128xf32>
    %30 = arith.addf %27, %29 : vector<8x128xf32>
    %c3 = arith.constant 3 : index
    %c0_19 = arith.constant 0 : index
    %c0_20 = arith.constant 0 : index
    %31 = vector.load %arg2[%c3, %c0_19, %c0_20] : memref<12x128x128xf32, #tpu.memory_space<vmem>>, vector<1x128x128xf32>
    %32 = vector.shape_cast %31 : vector<1x128x128xf32> to vector<128x128xf32>
    %cst_21 = arith.constant dense<0.000000e+00> : vector<8x128xf32>
    %33 = tpu.matmul %30, %32, %cst_21 {dimension_numbers = #tpu.dot_dimension_numbers<[1], [0], [0], [1], [0, 0, 1, 1], [], []>} : vector<8x128xf32>, vector<128x128xf32>, vector<8x128xf32> -> vector<8x128xf32>
    %c3_22 = arith.constant 3 : index
    %c0_23 = arith.constant 0 : index
    %c0_24 = arith.constant 0 : index
    %34 = vector.load %arg3[%c3_22, %c0_23, %c0_24] : memref<12x1x128xf32, #tpu.memory_space<vmem>>, vector<1x1x128xf32>
    %35 = vector.shape_cast %34 : vector<1x1x128xf32> to vector<1x128xf32>
    %36 = vector.broadcast %35 : vector<1x128xf32> to vector<8x128xf32>
    %37 = arith.addf %33, %36 : vector<8x128xf32>
    %cst_25 = arith.constant 1.000000e+00 : f32
    %38 = vector.broadcast %cst_25 : f32 to vector<8x128xf32>
    %39 = arith.mulf %37, %38 : vector<8x128xf32>
    %40 = arith.addf %39, %0 : vector<8x128xf32>
    %c4 = arith.constant 4 : index
    %c0_26 = arith.constant 0 : index
    %c0_27 = arith.constant 0 : index
    %41 = vector.load %arg2[%c4, %c0_26, %c0_27] : memref<12x128x128xf32, #tpu.memory_space<vmem>>, vector<1x128x128xf32>
    %42 = vector.shape_cast %41 : vector<1x128x128xf32> to vector<128x128xf32>
    %cst_28 = arith.constant dense<0.000000e+00> : vector<8x128xf32>
    %43 = tpu.matmul %40, %42, %cst_28 {dimension_numbers = #tpu.dot_dimension_numbers<[1], [0], [0], [1], [0, 0, 1, 1], [], []>} : vector<8x128xf32>, vector<128x128xf32>, vector<8x128xf32> -> vector<8x128xf32>
    %c4_29 = arith.constant 4 : index
    %c0_30 = arith.constant 0 : index
    %c0_31 = arith.constant 0 : index
    %44 = vector.load %arg3[%c4_29, %c0_30, %c0_31] : memref<12x1x128xf32, #tpu.memory_space<vmem>>, vector<1x1x128xf32>
    %45 = vector.shape_cast %44 : vector<1x1x128xf32> to vector<1x128xf32>
    %46 = vector.broadcast %45 : vector<1x128xf32> to vector<8x128xf32>
    %47 = arith.addf %43, %46 : vector<8x128xf32>
    %48 = math.sin %47 : vector<8x128xf32>
    %49 = arith.mulf %48, %48 : vector<8x128xf32>
    %50 = arith.addf %47, %49 : vector<8x128xf32>
    %c5 = arith.constant 5 : index
    %c0_32 = arith.constant 0 : index
    %c0_33 = arith.constant 0 : index
    %51 = vector.load %arg2[%c5, %c0_32, %c0_33] : memref<12x128x128xf32, #tpu.memory_space<vmem>>, vector<1x128x128xf32>
    %52 = vector.shape_cast %51 : vector<1x128x128xf32> to vector<128x128xf32>
    %cst_34 = arith.constant dense<0.000000e+00> : vector<8x128xf32>
    %53 = tpu.matmul %50, %52, %cst_34 {dimension_numbers = #tpu.dot_dimension_numbers<[1], [0], [0], [1], [0, 0, 1, 1], [], []>} : vector<8x128xf32>, vector<128x128xf32>, vector<8x128xf32> -> vector<8x128xf32>
    %c5_35 = arith.constant 5 : index
    %c0_36 = arith.constant 0 : index
    %c0_37 = arith.constant 0 : index
    %54 = vector.load %arg3[%c5_35, %c0_36, %c0_37] : memref<12x1x128xf32, #tpu.memory_space<vmem>>, vector<1x1x128xf32>
    %55 = vector.shape_cast %54 : vector<1x1x128xf32> to vector<1x128xf32>
    %56 = vector.broadcast %55 : vector<1x128xf32> to vector<8x128xf32>
    %57 = arith.addf %53, %56 : vector<8x128xf32>
    %58 = math.sin %57 : vector<8x128xf32>
    %59 = arith.mulf %58, %58 : vector<8x128xf32>
    %60 = arith.addf %57, %59 : vector<8x128xf32>
    %c6 = arith.constant 6 : index
    %c0_38 = arith.constant 0 : index
    %c0_39 = arith.constant 0 : index
    %61 = vector.load %arg2[%c6, %c0_38, %c0_39] : memref<12x128x128xf32, #tpu.memory_space<vmem>>, vector<1x128x128xf32>
    %62 = vector.shape_cast %61 : vector<1x128x128xf32> to vector<128x128xf32>
    %cst_40 = arith.constant dense<0.000000e+00> : vector<8x128xf32>
    %63 = tpu.matmul %60, %62, %cst_40 {dimension_numbers = #tpu.dot_dimension_numbers<[1], [0], [0], [1], [0, 0, 1, 1], [], []>} : vector<8x128xf32>, vector<128x128xf32>, vector<8x128xf32> -> vector<8x128xf32>
    %c6_41 = arith.constant 6 : index
    %c0_42 = arith.constant 0 : index
    %c0_43 = arith.constant 0 : index
    %64 = vector.load %arg3[%c6_41, %c0_42, %c0_43] : memref<12x1x128xf32, #tpu.memory_space<vmem>>, vector<1x1x128xf32>
    %65 = vector.shape_cast %64 : vector<1x1x128xf32> to vector<1x128xf32>
    %66 = vector.broadcast %65 : vector<1x128xf32> to vector<8x128xf32>
    %67 = arith.addf %63, %66 : vector<8x128xf32>
    %68 = math.sin %67 : vector<8x128xf32>
    %69 = arith.mulf %68, %68 : vector<8x128xf32>
    %70 = arith.addf %67, %69 : vector<8x128xf32>
    %c7 = arith.constant 7 : index
    %c0_44 = arith.constant 0 : index
    %c0_45 = arith.constant 0 : index
    %71 = vector.load %arg2[%c7, %c0_44, %c0_45] : memref<12x128x128xf32, #tpu.memory_space<vmem>>, vector<1x128x128xf32>
    %72 = vector.shape_cast %71 : vector<1x128x128xf32> to vector<128x128xf32>
    %cst_46 = arith.constant dense<0.000000e+00> : vector<8x128xf32>
    %73 = tpu.matmul %70, %72, %cst_46 {dimension_numbers = #tpu.dot_dimension_numbers<[1], [0], [0], [1], [0, 0, 1, 1], [], []>} : vector<8x128xf32>, vector<128x128xf32>, vector<8x128xf32> -> vector<8x128xf32>
    %c7_47 = arith.constant 7 : index
    %c0_48 = arith.constant 0 : index
    %c0_49 = arith.constant 0 : index
    %74 = vector.load %arg3[%c7_47, %c0_48, %c0_49] : memref<12x1x128xf32, #tpu.memory_space<vmem>>, vector<1x1x128xf32>
    %75 = vector.shape_cast %74 : vector<1x1x128xf32> to vector<1x128xf32>
    %76 = vector.broadcast %75 : vector<1x128xf32> to vector<8x128xf32>
    %77 = arith.addf %73, %76 : vector<8x128xf32>
    %cst_50 = arith.constant 1.000000e+00 : f32
    %78 = vector.broadcast %cst_50 : f32 to vector<8x128xf32>
    %79 = arith.mulf %77, %78 : vector<8x128xf32>
    %80 = arith.addf %79, %40 : vector<8x128xf32>
    %c8 = arith.constant 8 : index
    %c0_51 = arith.constant 0 : index
    %c0_52 = arith.constant 0 : index
    %81 = vector.load %arg2[%c8, %c0_51, %c0_52] : memref<12x128x128xf32, #tpu.memory_space<vmem>>, vector<1x128x128xf32>
    %82 = vector.shape_cast %81 : vector<1x128x128xf32> to vector<128x128xf32>
    %cst_53 = arith.constant dense<0.000000e+00> : vector<8x128xf32>
    %83 = tpu.matmul %80, %82, %cst_53 {dimension_numbers = #tpu.dot_dimension_numbers<[1], [0], [0], [1], [0, 0, 1, 1], [], []>} : vector<8x128xf32>, vector<128x128xf32>, vector<8x128xf32> -> vector<8x128xf32>
    %c8_54 = arith.constant 8 : index
    %c0_55 = arith.constant 0 : index
    %c0_56 = arith.constant 0 : index
    %84 = vector.load %arg3[%c8_54, %c0_55, %c0_56] : memref<12x1x128xf32, #tpu.memory_space<vmem>>, vector<1x1x128xf32>
    %85 = vector.shape_cast %84 : vector<1x1x128xf32> to vector<1x128xf32>
    %86 = vector.broadcast %85 : vector<1x128xf32> to vector<8x128xf32>
    %87 = arith.addf %83, %86 : vector<8x128xf32>
    %88 = math.sin %87 : vector<8x128xf32>
    %89 = arith.mulf %88, %88 : vector<8x128xf32>
    %90 = arith.addf %87, %89 : vector<8x128xf32>
    %c9 = arith.constant 9 : index
    %c0_57 = arith.constant 0 : index
    %c0_58 = arith.constant 0 : index
    %91 = vector.load %arg2[%c9, %c0_57, %c0_58] : memref<12x128x128xf32, #tpu.memory_space<vmem>>, vector<1x128x128xf32>
    %92 = vector.shape_cast %91 : vector<1x128x128xf32> to vector<128x128xf32>
    %cst_59 = arith.constant dense<0.000000e+00> : vector<8x128xf32>
    %93 = tpu.matmul %90, %92, %cst_59 {dimension_numbers = #tpu.dot_dimension_numbers<[1], [0], [0], [1], [0, 0, 1, 1], [], []>} : vector<8x128xf32>, vector<128x128xf32>, vector<8x128xf32> -> vector<8x128xf32>
    %c9_60 = arith.constant 9 : index
    %c0_61 = arith.constant 0 : index
    %c0_62 = arith.constant 0 : index
    %94 = vector.load %arg3[%c9_60, %c0_61, %c0_62] : memref<12x1x128xf32, #tpu.memory_space<vmem>>, vector<1x1x128xf32>
    %95 = vector.shape_cast %94 : vector<1x1x128xf32> to vector<1x128xf32>
    %96 = vector.broadcast %95 : vector<1x128xf32> to vector<8x128xf32>
    %97 = arith.addf %93, %96 : vector<8x128xf32>
    %98 = math.sin %97 : vector<8x128xf32>
    %99 = arith.mulf %98, %98 : vector<8x128xf32>
    %100 = arith.addf %97, %99 : vector<8x128xf32>
    %c10 = arith.constant 10 : index
    %c0_63 = arith.constant 0 : index
    %c0_64 = arith.constant 0 : index
    %101 = vector.load %arg2[%c10, %c0_63, %c0_64] : memref<12x128x128xf32, #tpu.memory_space<vmem>>, vector<1x128x128xf32>
    %102 = vector.shape_cast %101 : vector<1x128x128xf32> to vector<128x128xf32>
    %cst_65 = arith.constant dense<0.000000e+00> : vector<8x128xf32>
    %103 = tpu.matmul %100, %102, %cst_65 {dimension_numbers = #tpu.dot_dimension_numbers<[1], [0], [0], [1], [0, 0, 1, 1], [], []>} : vector<8x128xf32>, vector<128x128xf32>, vector<8x128xf32> -> vector<8x128xf32>
    %c10_66 = arith.constant 10 : index
    %c0_67 = arith.constant 0 : index
    %c0_68 = arith.constant 0 : index
    %104 = vector.load %arg3[%c10_66, %c0_67, %c0_68] : memref<12x1x128xf32, #tpu.memory_space<vmem>>, vector<1x1x128xf32>
    %105 = vector.shape_cast %104 : vector<1x1x128xf32> to vector<1x128xf32>
    %106 = vector.broadcast %105 : vector<1x128xf32> to vector<8x128xf32>
    %107 = arith.addf %103, %106 : vector<8x128xf32>
    %108 = math.sin %107 : vector<8x128xf32>
    %109 = arith.mulf %108, %108 : vector<8x128xf32>
    %110 = arith.addf %107, %109 : vector<8x128xf32>
    %c11 = arith.constant 11 : index
    %c0_69 = arith.constant 0 : index
    %c0_70 = arith.constant 0 : index
    %111 = vector.load %arg2[%c11, %c0_69, %c0_70] : memref<12x128x128xf32, #tpu.memory_space<vmem>>, vector<1x128x128xf32>
    %112 = vector.shape_cast %111 : vector<1x128x128xf32> to vector<128x128xf32>
    %cst_71 = arith.constant dense<0.000000e+00> : vector<8x128xf32>
    %113 = tpu.matmul %110, %112, %cst_71 {dimension_numbers = #tpu.dot_dimension_numbers<[1], [0], [0], [1], [0, 0, 1, 1], [], []>} : vector<8x128xf32>, vector<128x128xf32>, vector<8x128xf32> -> vector<8x128xf32>
    %c11_72 = arith.constant 11 : index
    %c0_73 = arith.constant 0 : index
    %c0_74 = arith.constant 0 : index
    %114 = vector.load %arg3[%c11_72, %c0_73, %c0_74] : memref<12x1x128xf32, #tpu.memory_space<vmem>>, vector<1x1x128xf32>
    %115 = vector.shape_cast %114 : vector<1x1x128xf32> to vector<1x128xf32>
    %116 = vector.broadcast %115 : vector<1x128xf32> to vector<8x128xf32>
    %117 = arith.addf %113, %116 : vector<8x128xf32>
    %c0_75 = arith.constant 0 : index
    %c0_76 = arith.constant 0 : index
    %118 = vector.load %arg4[%c0_75, %c0_76] : memref<8x128xf32, #tpu.memory_space<vmem>>, vector<8x128xf32>
    tpu.vector_store %arg4[%c0_75, %c0_76], %117 {strides = array<i32>} : memref<8x128xf32, #tpu.memory_space<vmem>>, vector<8x128xf32>,
    return
  }
  func.func @transform_0(%arg0: i32) -> (i32, i32) {
    %c0_i32 = arith.constant 0 : i32
    %c0_i32_0 = arith.constant 0 : i32
    return %arg0, %c0_i32 : i32, i32
  }
  func.func @transform_1(%arg0: i32) -> (i32, i32, i32) {
    %c0_i32 = arith.constant 0 : i32
    %c0_i32_0 = arith.constant 0 : i32
    %c0_i32_1 = arith.constant 0 : i32
    %c0_i32_2 = arith.constant 0 : i32
    return %c0_i32, %c0_i32_0, %c0_i32_1 : i32, i32, i32
  }
  func.func @transform_2(%arg0: i32) -> (i32, i32, i32) {
    %c0_i32 = arith.constant 0 : i32
    %c0_i32_0 = arith.constant 0 : i32
    %c0_i32_1 = arith.constant 0 : i32
    %c0_i32_2 = arith.constant 0 : i32
    return %c0_i32, %c0_i32_0, %c0_i32_1 : i32, i32, i32
  }
  func.func @transform_3(%arg0: i32) -> (i32, i32) {
    %c0_i32 = arith.constant 0 : i32
    %c0_i32_0 = arith.constant 0 : i32
    return %arg0, %c0_i32 : i32, i32
  }
}

</mosaic_0001>

<bundles_post_ra>
// kernel: tpu_custom_call.1
= control target key start
LH: loop header
LB: loop body
LE: loop exit
PB: predicated region body
PF: predicated region fallthrough
CT: control target
= control target key end

     0   :  { %8 = vsyncpa [#allocation3], 0  ;;  %s3578_s0 = inlined_call_operand.hbm [shape: f32[8,128], index: 0, kind: input, shape index: {}]   ;;  %s3579_s1 = inlined_call_operand.hbm [shape: f32[12,128,128], index: 1, kind: input, shape index: {}]   ;;  %s3580_s2 = inlined_call_operand.hbm [shape: f32[12,1,128], index: 2, kind: input, shape index: {}]   ;;  %s3581_s3 = inlined_call_operand.hbm [shape: f32[8,128], index: 3, kind: output, shape index: {}]  }
   0x1   :  { %9 = vsyncpa [#allocation6], 0 }
   0x2   :  { %10 = vsyncpa [#allocation4], 0  ;;  %s3013_s12 = smov [#allocation5]  }
   0x3   :  { %s26_s13 = sshll.u32 %s3013_s12, 4  ;;  %s27_s13 = int_to_ptr.vmem [resolvable:$true] %s26_s13 }
   0x4   :  { %s2935_s14 = scalar_lea.vmem %s27_s13, 24576  ;;  %p2940_p1 = scmp.lt.s32.totalorder %s27_s13, %s27_s13 }
   0x5   :  { %p2936_p0 = scmp.ne.s32.totalorder %s27_s13, %s2935_s14  ;;  %p2941_p2 = scmp.lt.s32.totalorder %s2935_s14, %s2935_s14 }
   0x7   :  { %p2942_p3 = por %p2941_p2, %p2940_p1 }
   0x9   :  { %p2943_p4 = pnand %p2942_p3, %p2936_p0 }
   0xb   :  { %2946 = shalt.err (!%p2943_p4)
}
   0xc   :  { %s3014_s15 = smov 128   ;;  %s3015_s16 = smov 8  }
   0xd   :  { %32 = dma.hbm_to_vmem [thread:$0]  %s3579_s1, 24576, %s27_s13, [#allocation6], %s3014_s15, %s3014_s15, %s3015_s16  }
   0xe   :  { %s3016_s19 = smov [#allocation2]   ;;  %s3017_s21 = smov [#allocation7]  }
   0xf   :  { %s17_s20 = sshll.u32 %s3016_s19, 4  ;;  %s38_s22 = sshll.u32 %s3017_s21, 4  ;;  %s18_s20 = int_to_ptr.vmem [resolvable:$true] %s17_s20  ;;  %s39_s22 = int_to_ptr.vmem [resolvable:$true] %s38_s22 }
  0x10   :  { %s2955_s23 = scalar_lea.vmem %s18_s20, 128  ;;  %p2960_p6 = scmp.lt.s32.totalorder %s18_s20, %s18_s20 }
  0x11   :  { %p2956_p5 = scmp.ne.s32.totalorder %s18_s20, %s2955_s23  ;;  %p2961_p7 = scmp.lt.s32.totalorder %s2955_s23, %s2955_s23 }
  0x13   :  { %p2962_p8 = por %p2961_p7, %p2960_p6 }
  0x15   :  { %p2963_p9 = pnand %p2962_p8, %p2956_p5 }
  0x17   :  { %2966 = shalt.err (!%p2963_p9)
}
  0x18   :  { %20 = dma.hbm_to_vmem [thread:$0]  %s3578_s0, 128, %s18_s20, [#allocation3]  }
  0x19   :  { %s2975_s26 = scalar_lea.vmem %s39_s22, 192  ;;  %p2980_p11 = scmp.lt.s32.totalorder %s39_s22, %s39_s22 }
  0x1a   :  { %p2976_p10 = scmp.ne.s32.totalorder %s39_s22, %s2975_s26  ;;  %p2981_p12 = scmp.lt.s32.totalorder %s2975_s26, %s2975_s26 }
  0x1c   :  { %p2982_p13 = por %p2981_p12, %p2980_p11 }
  0x1e   :  { %p2983_p0 = pnand %p2982_p13, %p2976_p10 }
  0x20   :  { %2986 = shalt.err (!%p2983_p0)
}
  0x21   :  { %s3018_s1 = smov 16   ;;  %s3019_s27 = smov 1  }
  0x22   :  { %44 = dma.hbm_to_vmem [thread:$0]  %s3580_s2, 192, %s39_s22, [#allocation6], %s3018_s1, %s3018_s1, %s3019_s27  }
  0x23   :  { %3007 = dma.done.wait [#allocation3], 128  }
  0x24   :  { %3008 = vsyncadd [#allocation3], 4294967168 }
  0x25   :  { %3009 = dma.done.wait [#allocation6], 24768  }
  0x26   :  { %3010 = vsyncadd [#allocation6], 4294942528  ;;  %v3020_v0 = vmov 0.0   ;;  %vm3021_vm0 = vmmov 0   ;;  %v70_v1 = vld [vmem:[#allocation5 + $0x78] sm:$0xff]  ;;  %v69_v2 = vld [vmem:[#allocation5 + $0x70] sm:$0xff] }
  0x27   :  { %2418 = vmatprep.subr.mxu0 %v3020_v0  ;;  %2450 = vmatprep.mubr.msk.f32.mxu0 %vm3021_vm0, %v3020_v0  ;;  %v68_v3 = vld [vmem:[#allocation5 + $0x68] sm:$0xff]  ;;  %v67_v4 = vld [vmem:[#allocation5 + $0x60] sm:$0xff]  ;;  %v66_v5 = vld [vmem:[#allocation5 + $0x58] sm:$0xff]  ;;  %v3022_v49 = vmov 2102212464   ;;  %s3028_s0 = smov [#allocation8]  }
  0x28   :  { %2453 = vmatprep.subr.mxu1 %v3020_v0  ;;  %2485 = vmatprep.mubr.msk.f32.mxu1 %vm3021_vm0, %v3020_v0  ;;  %v65_v6 = vld [vmem:[#allocation5 + $0x50] sm:$0xff]  ;;  %v64_v7 = vld [vmem:[#allocation5 + $0x48] sm:$0xff]  ;;  %v63_v8 = vld [vmem:[#allocation5 + $0x40] sm:$0xff]  ;;  %v3023_v51 = vmov 920167782   ;;  %s2156_s2 = sshll.u32 %s3028_s0, 4  ;;  %s2157_s2 = int_to_ptr.vmem [resolvable:$true] %s2156_s2 }
  0x29   :  { %2419 = vmatpush3.msra.mxu0 %v70_v1  ;;  %v62_v9 = vld [vmem:[#allocation5 + $0x38] sm:$0xff]  ;;  %v61_v10 = vld [vmem:[#allocation5 + $0x30] sm:$0xff]  ;;  %v60_v11 = vld [vmem:[#allocation5 + $0x28] sm:$0xff]  ;;  %v3024_v55 = vmov 1326507024   ;;  %s2987_s30 = scalar_lea.vmem %s2157_s2, 128  ;;  %p2992_p2 = scmp.lt.s32.totalorder %s2157_s2, %s2157_s2 }
  0x2a   :  { %2420 = vmatprep.subr.mxu0 %v3020_v0  ;;  %v59_v12 = vld [vmem:[#allocation5 + $0x20] sm:$0xff]  ;;  %v58_v13 = vld [vmem:[#allocation5 + $0x18] sm:$0xff]  ;;  %v57_v14 = vld [vmem:[#allocation5 + $0x10] sm:$0xff]  ;;  %v3025_v57 = vmov 683565275   ;;  %p2988_p1 = scmp.ne.s32.totalorder %s2157_s2, %s2987_s30  ;;  %p2993_p3 = scmp.lt.s32.totalorder %s2987_s30, %s2987_s30 }
  0x2b   :  { %2421 = vmatpush3.msra.mxu0 %v69_v2  ;;  %v56_v15 = vld [vmem:[#allocation5 + $0x8] sm:$0xff]  ;;  %v55_v16 = vld [vmem:[#allocation5] sm:$0xff]  ;;  %v54_v17 = vld [vmem:[#allocation2] sm:$0xff]  ;;  %v3026_v59 = vmov 2475754826  }
  0x2c   :  { %2422 = vmatprep.subr.mxu0 %v3020_v0  ;;  %v270_v18 = vld [vmem:[#allocation5 + $0xf8] sm:$0xff]  ;;  %v269_v19 = vld [vmem:[#allocation5 + $0xf0] sm:$0xff]  ;;  %v268_v20 = vld [vmem:[#allocation5 + $0xe8] sm:$0xff]  ;;  %v3027_v62 = vmov 2131351028   ;;  %p2994_p4 = por %p2993_p3, %p2992_p2 }
  0x2d   :  { %2423 = vmatpush3.msra.mxu0 %v68_v3  ;;  %2454 = vmatpush3.msra.mxu1 %v270_v18  ;;  %v267_v21 = vld [vmem:[#allocation5 + $0xe0] sm:$0xff]  ;;  %v266_v22 = vld [vmem:[#allocation5 + $0xd8] sm:$0xff]  ;;  %v265_v23 = vld [vmem:[#allocation5 + $0xd0] sm:$0xff] }
  0x2e   :  { %2424 = vmatprep.subr.mxu0 %v3020_v0  ;;  %2455 = vmatprep.subr.mxu1 %v3020_v0  ;;  %v264_v24 = vld [vmem:[#allocation5 + $0xc8] sm:$0xff]  ;;  %v263_v25 = vld [vmem:[#allocation5 + $0xc0] sm:$0xff]  ;;  %v262_v26 = vld [vmem:[#allocation5 + $0xb8] sm:$0xff]  ;;  %p2995_p5 = pnand %p2994_p4, %p2988_p1 }
  0x2f   :  { %2425 = vmatpush3.msra.mxu0 %v67_v4  ;;  %2456 = vmatpush3.msra.mxu1 %v269_v19  ;;  %v261_v27 = vld [vmem:[#allocation5 + $0xb0] sm:$0xff]  ;;  %v260_v28 = vld [vmem:[#allocation5 + $0xa8] sm:$0xff]  ;;  %v259_v29 = vld [vmem:[#allocation5 + $0xa0] sm:$0xff] }
  0x30   :  { %2426 = vmatprep.subr.mxu0 %v3020_v0  ;;  %2457 = vmatprep.subr.mxu1 %v3020_v0  ;;  %v258_v30 = vld [vmem:[#allocation5 + $0x98] sm:$0xff]  ;;  %v257_v31 = vld [vmem:[#allocation5 + $0x90] sm:$0xff]  ;;  %v256_v32 = vld [vmem:[#allocation5 + $0x88] sm:$0xff] }
  0x31   :  { %2427 = vmatpush3.msra.mxu0 %v66_v5  ;;  %2458 = vmatpush3.msra.mxu1 %v268_v20  ;;  %v255_v33 = vld [vmem:[#allocation5 + $0x80] sm:$0xff] }
  0x32   :  { %2428 = vmatprep.subr.mxu0 %v3020_v0  ;;  %2459 = vmatprep.subr.mxu1 %v3020_v0  ;;  %v2166_v34 = vld [vmem:[#allocation7] ss:$0 sm:$0xff] }
  0x33   :  { %2429 = vmatpush3.msra.mxu0 %v65_v6  ;;  %2460 = vmatpush3.msra.mxu1 %v267_v21 }
  0x34   :  { %2430 = vmatprep.subr.mxu0 %v3020_v0  ;;  %2461 = vmatprep.subr.mxu1 %v3020_v0 }
  0x35   :  { %2431 = vmatpush3.msra.mxu0 %v64_v7  ;;  %2462 = vmatpush3.msra.mxu1 %v266_v22 }
  0x36   :  { %2432 = vmatprep.subr.mxu0 %v3020_v0  ;;  %2463 = vmatprep.subr.mxu1 %v3020_v0 }
  0x37   :  { %2433 = vmatpush3.msra.mxu0 %v63_v8  ;;  %2464 = vmatpush3.msra.mxu1 %v265_v23 }
  0x38   :  { %2434 = vmatprep.subr.mxu0 %v3020_v0  ;;  %2465 = vmatprep.subr.mxu1 %v3020_v0 }
  0x39   :  { %2435 = vmatpush3.msra.mxu0 %v62_v9  ;;  %2466 = vmatpush3.msra.mxu1 %v264_v24 }
  0x3a   :  { %2436 = vmatprep.subr.mxu0 %v3020_v0  ;;  %2467 = vmatprep.subr.mxu1 %v3020_v0 }
  0x3b   :  { %2437 = vmatpush3.msra.mxu0 %v61_v10  ;;  %2468 = vmatpush3.msra.mxu1 %v263_v25 }
  0x3c   :  { %2438 = vmatprep.subr.mxu0 %v3020_v0  ;;  %2469 = vmatprep.subr.mxu1 %v3020_v0 }
  0x3d   :  { %2439 = vmatpush3.msra.mxu0 %v60_v11  ;;  %2470 = vmatpush3.msra.mxu1 %v262_v26 }
  0x3e   :  { %2440 = vmatprep.subr.mxu0 %v3020_v0  ;;  %2471 = vmatprep.subr.mxu1 %v3020_v0 }
  0x3f   :  { %2441 = vmatpush3.msra.mxu0 %v59_v12  ;;  %2472 = vmatpush3.msra.mxu1 %v261_v27 }
  0x40   :  { %2442 = vmatprep.subr.mxu0 %v3020_v0  ;;  %2473 = vmatprep.subr.mxu1 %v3020_v0 }
  0x41   :  { %2443 = vmatpush3.msra.mxu0 %v58_v13  ;;  %2474 = vmatpush3.msra.mxu1 %v260_v28 }
  0x42   :  { %2444 = vmatprep.subr.mxu0 %v3020_v0  ;;  %2475 = vmatprep.subr.mxu1 %v3020_v0 }
  0x43   :  { %2445 = vmatpush3.msra.mxu0 %v57_v14  ;;  %2476 = vmatpush3.msra.mxu1 %v259_v29 }
  0x44   :  { %2446 = vmatprep.subr.mxu0 %v3020_v0  ;;  %2477 = vmatprep.subr.mxu1 %v3020_v0 }
  0x45   :  { %2447 = vmatpush3.msra.mxu0 %v56_v15  ;;  %2478 = vmatpush3.msra.mxu1 %v258_v30 }
  0x46   :  { %2448 = vmatprep.subr.mxu0 %v3020_v0  ;;  %2479 = vmatprep.subr.mxu1 %v3020_v0 }
  0x47   :  { %2449 = vmatpush3.msra.mxu0 %v55_v16  ;;  %2480 = vmatpush3.msra.mxu1 %v257_v31 }
  0x48   :  { %2451 = vmatmul.mubr.f32.vlgmr.msra.gmra.mxu0 %v54_v17  ;;  %2488 = vmatprep.subr.mxu0 %v3020_v0 }
  0x49   :  { %2520 = vmatprep.mubr.msk.f32.mxu0 %vm3021_vm0, %v3020_v0  ;;  %2481 = vmatprep.subr.mxu1 %v3020_v0 }
  0x4a   :  { %2482 = vmatpush3.msra.mxu1 %v256_v32 }
  0x4b   :  { %2483 = vmatprep.subr.mxu1 %v3020_v0 }
  0x4c   :  { %2484 = vmatpush3.msra.mxu1 %v255_v33 }
  0x4d   :  { %2523 = vmatprep.subr.mxu1 %v3020_v0 }
 0x108   :  { %v144_v35 = vpop.f32.mrf.mxu0 }
 0x109   :  { %v3098_v36 = vadd.f32 %v2166_v34, %v144_v35 }
 0x10a   :  { %v2452_v37 = vpop.f32.mrf.mxu0 }
 0x10b   :  { %v151_v38 = vand.u32 2139095040, %v3098_v36  ;;  %v148_v39 = vand.u32 2147483647, %v3098_v36  ;;  %vm150_vm8 = vcmp.lt.s32.totalorder %v3098_v36, 0  ;;  %vm240_vm13 = vweird.f32 %v3098_v36 }
 0x10d   :  { %v152_v40 = vshrl.u32 %v151_v38, 23  ;;  %v155_v42 = vand.u32 8388607, %v148_v39  ;;  %vm149_vm9 = vcmp.le.f32.partialorder %v148_v39, 0.7853982 }
 0x10f   :  { %v2167_v41 = vadd.s32 4294967169, %v152_v40  ;;  %v156_v45 = vor.u32 8388608, %v155_v42 }
 0x111   :  { %v158_v43 = vadd.s32 1, %v2167_v41  ;;  %v196_v53 = vshll.u32 %v156_v45, 8 }
 0x113   :  { %vm159_vm1 = vcmp.gt.s32.totalorder %v158_v43, 0 }
 0x114   :  { %v160_v44 = vsel %vm159_vm1, %v158_v43, 0 }
 0x115   :  { %v162_v46 = vand.u32 31, %v160_v44  ;;  %v161_v47 = vshrl.u32 %v160_v44, 5 }
 0x117   :  { %v163_v48 = vsub.s32 32, %v162_v46  ;;  %v174_v50 = vshll.u32 %v3022_v49, %v162_v46  ;;  %v177_v52 = vshll.u32 %v3023_v51, %v162_v46  ;;  %v165_v58 = vshll.u32 %v3025_v57, %v162_v46 }
 0x118   :  { %v168_v61 = vshll.u32 %v3026_v59, %v162_v46  ;;  %v171_v1 = vshll.u32 %v3027_v62, %v162_v46  ;;  %vm183_vm2 = vcmp.lt.s32.totalorder %v161_v47, 4  ;;  %vm180_vm3 = vcmp.lt.s32.totalorder %v161_v47, 1 }
 0x119   :  { %v175_v54 = vshrl.u32 %v3023_v51, %v163_v48  ;;  %v178_v56 = vshrl.u32 %v3024_v55, %v163_v48  ;;  %v166_v60 = vshrl.u32 %v3026_v59, %v163_v48  ;;  %v169_v63 = vshrl.u32 %v3027_v62, %v163_v48 }
 0x11a   :  { %v172_v2 = vshrl.u32 %v3022_v49, %v163_v48  ;;  %v164_v6 = vshrl.u32 %v3025_v57, %v163_v48  ;;  %vm181_vm4 = vcmp.lt.s32.totalorder %v161_v47, 2  ;;  %vm182_vm5 = vcmp.lt.s32.totalorder %v161_v47, 3 }
 0x11b   :  { %v176_v3 = vor.u32 %v175_v54, %v174_v50  ;;  %v179_v4 = vor.u32 %v178_v56, %v177_v52  ;;  %v167_v5 = vor.u32 %v166_v60, %v165_v58  ;;  %v170_v7 = vor.u32 %v169_v63, %v168_v61 }
 0x11c   :  { %v173_v8 = vor.u32 %v172_v2, %v171_v1 }
 0x11d   :  { %v189_v9 = vsel %vm183_vm2, %v176_v3, 920167782  ;;  %v193_v10 = vsel %vm183_vm2, %v179_v4, 1326507024  ;;  %v188_v12 = vsel %vm180_vm3, %v167_v5, %v170_v7  ;;  %v184_v15 = vsel %vm180_vm3, %v164_v6, %v167_v5 }
 0x11e   :  { %v185_v11 = vsel %vm183_vm2, %v173_v8, 2102212464  ;;  %v190_v13 = vsel %vm182_vm5, %v173_v8, %v189_v9  ;;  %v192_v14 = vsel %vm180_vm3, %v170_v7, %v173_v8  ;;  %v194_v18 = vsel %vm182_vm5, %v176_v3, %v193_v10 }
 0x11f   :  { %v186_v16 = vsel %vm182_vm5, %v170_v7, %v185_v11  ;;  %v191_v17 = vsel %vm181_vm4, %v188_v12, %v190_v13  ;;  %v195_v19 = vsel %vm181_vm4, %v192_v14, %v194_v18  ;;  %v471_v12 = vld [vmem:[#allocation5 + $0x178] sm:$0xff]  ;;  %v470_v13 = vld [vmem:[#allocation5 + $0x170] sm:$0xff]  ;;  %v469_v14 = vld [vmem:[#allocation5 + $0x168] sm:$0xff] }
 0x120   :  { %v3115_v20 = vmul.u32.u64.low %v196_v53, %v191_v17  ;;  %v3116_v21 = vmul.u32.u64.high %v196_v53, %v191_v17, %v3115_v20  ;;  %v3118_v22 = vmul.u32.u64.low %v196_v53, %v195_v19  ;;  %v3119_v23 = vmul.u32.u64.high %v196_v53, %v195_v19, %v3118_v22  ;;  %2489 = vmatpush3.msra.mxu0 %v471_v12  ;;  %v465_v17 = vld [vmem:[#allocation5 + $0x148] sm:$0xff]  ;;  %v464_v18 = vld [vmem:[#allocation5 + $0x140] sm:$0xff]  ;;  %v463_v19 = vld [vmem:[#allocation5 + $0x138] sm:$0xff] }
 0x121   :  { %v187_v24 = vsel %vm181_vm4, %v184_v15, %v186_v16  ;;  %2490 = vmatprep.subr.mxu0 %v3020_v0  ;;  %v468_v15 = vld [vmem:[#allocation5 + $0x160] sm:$0xff]  ;;  %v466_v16 = vld [vmem:[#allocation5 + $0x150] sm:$0xff] }
 0x122   :  { %v206_v25 = vadd.s32 1, %v3116_v21  ;;  %v203_v26 = vmul.u32 %v196_v53, %v187_v24  ;;  %vm205_vm6 = vc.u32 %v3119_v23, %v3115_v20  ;;  %v204_v40 = vadd.s32 %v3115_v20, %v3119_v23  ;;  %2491 = vmatpush3.msra.mxu0 %v470_v13  ;;  %v462_v20 = vld [vmem:[#allocation5 + $0x130] sm:$0xff]  ;;  %v460_v22 = vld [vmem:[#allocation5 + $0x120] sm:$0xff]  ;;  %v459_v23 = vld [vmem:[#allocation5 + $0x118] sm:$0xff] }
 0x123   :  { %2492 = vmatprep.subr.mxu0 %v3020_v0  ;;  %v458_v24 = vld [vmem:[#allocation5 + $0x110] sm:$0xff] }
 0x124   :  { %v207_v27 = vsel %vm205_vm6, %v206_v25, %v3116_v21  ;;  %2493 = vmatpush3.msra.mxu0 %v469_v14  ;;  %v461_v21 = vld [vmem:[#allocation5 + $0x128] sm:$0xff] }
 0x125   :  { %v208_v28 = vadd.s32 %v207_v27, %v203_v26  ;;  %2494 = vmatprep.subr.mxu0 %v3020_v0  ;;  %v457_v25 = vld [vmem:[#allocation5 + $0x108] sm:$0xff]  ;;  %v456_v26 = vld [vmem:[#allocation5 + $0x100] sm:$0xff] }
 0x126   :  { %2495 = vmatpush3.msra.mxu0 %v468_v15  ;;  %v2171_v27 = vld [vmem:[#allocation7 + $0x1] ss:$0 sm:$0xff] }
 0x127   :  { %v209_v29 = vadd.s32 536870912, %v208_v28  ;;  %2496 = vmatprep.subr.mxu0 %v3020_v0 }
 0x129   :  { %v210_v30 = vshrl.u32 %v209_v29, 30 }
 0x12b   :  { %v211_v31 = vshll.u32 %v210_v30, 30  ;;  %v234_v56 = vsub.s32 4, %v210_v30 }
 0x12d   :  { %v212_v32 = vsub.s32 %v208_v28, %v211_v31  ;;  %v235_v61 = vsel %vm150_vm8, %v234_v56, %v210_v30 }
 0x12e   :  { %v237_v63 = vsel %vm149_vm9, 0, %v235_v61 }
 0x12f   :  { %v214_v33 = vsub.s32 0, %v212_v32  ;;  %v241_v1 = vadd.s32 3, %v237_v63 }
 0x131   :  { %v2168_v34 = vmin.u32 %v214_v33, %v212_v32  ;;  %v242_v2 = vand.u32 3, %v241_v1 }
 0x133   :  { %v216_v35 = vclz %v2168_v34  ;;  %vm247_vm10 = vcmp.eq.s32.totalorder %v242_v2, 2  ;;  %vm244_vm11 = vcmp.eq.s32.totalorder %v242_v2, 0  ;;  %vm243_vm12 = vcmp.lt.s32.totalorder %v242_v2, 2 }
 0x135   :  { %v2169_v37 = vadd.s32 4294967294, %v216_v35 }
 0x137   :  { %vm2170_vm7 = vcmp.lt.s32.totalorder %v2169_v37, 0 }
 0x138   :  { %v219_v38 = vsel %vm2170_vm7, 0, %v2169_v37 }
 0x139   :  { %v220_v41 = vsub.s32 32, %v219_v38  ;;  %v224_v42 = vsub.s32 4294967266, %v219_v38  ;;  %v221_v43 = vshll.u32 %v212_v32, %v219_v38 }
 0x13b   :  { %v222_v44 = vshrl.u32 %v204_v40, %v220_v41  ;;  %v225_v45 = vadd.s32 127, %v224_v42 }
 0x13d   :  { %v223_v46 = vor.u32 %v222_v44, %v221_v43  ;;  %v226_v47 = vshll.u32 %v225_v45, 23 }
 0x13f   :  { %v227_v48 = vor.u32 4788187, %v226_v47  ;;  %v230_v52 = vcvt.s32.f32 %v223_v46 }
 0x141   :  { %v228_v50 = vand.u32 2147483647, %v227_v48 }
 0x143   :  { %v231_v53 = vmul.f32 %v230_v52, %v228_v50 }
 0x145   :  { %v232_v54 = vxor.u32 2147483648, %v231_v53 }
 0x147   :  { %v233_v58 = vsel %vm150_vm8, %v232_v54, %v231_v53 }
 0x148   :  { %v236_v60 = vsel %vm149_vm9, %v3098_v36, %v233_v58 }
 0x149   :  { %2890 = vcosq.f32 %v236_v60 }
 0x14a   :  { %2892 = vsinq.f32 %v236_v60 }
 0x156   :  { %v2891_v3 = vpop.eup %2890 }
 0x157   :  { %v2893_v4 = vpop.eup %2892  ;;  %v248_v5 = vxor.u32 2147483648, %v2891_v3 }
 0x158   :  { %v245_v6 = vxor.u32 2147483648, %v2893_v4 }
 0x159   :  { %v249_v7 = vsel %vm247_vm10, %v248_v5, %v2893_v4 }
 0x15a   :  { %v246_v8 = vsel %vm244_vm11, %v2891_v3, %v245_v6 }
 0x15b   :  { %v250_v39 = vsel %vm243_vm12, %v246_v8, %v249_v7 }
 0x15c   :  { %v251_v9 = vsel %vm240_vm13, nan, %v250_v39 }
 0x15d   :  { %v252_v10 = vmul.f32 %v251_v9, %v251_v9 }
 0x15f   :  { %v253_v11 = vadd.f32 %v252_v10, %v3098_v36  ;;  %v467_v36 = vld [vmem:[#allocation5 + $0x158] sm:$0xff] }
 0x160   :  { %2497 = vmatpush3.msra.mxu0 %v467_v36 }
 0x161   :  { %2486 = vmatmul.mubr.f32.vlgmr.msra.gmra.mxu1 %v253_v11  ;;  %2498 = vmatprep.subr.mxu0 %v3020_v0 }
 0x162   :  { %2555 = vmatprep.mubr.msk.f32.mxu1 %vm3021_vm0, %v3020_v0  ;;  %2499 = vmatpush3.msra.mxu0 %v466_v16 }
 0x163   :  { %2500 = vmatprep.subr.mxu0 %v3020_v0 }
 0x164   :  { %2501 = vmatpush3.msra.mxu0 %v465_v17 }
 0x165   :  { %2502 = vmatprep.subr.mxu0 %v3020_v0 }
 0x166   :  { %2503 = vmatpush3.msra.mxu0 %v464_v18 }
 0x167   :  { %2504 = vmatprep.subr.mxu0 %v3020_v0 }
 0x168   :  { %2505 = vmatpush3.msra.mxu0 %v463_v19 }
 0x169   :  { %2506 = vmatprep.subr.mxu0 %v3020_v0 }
 0x16a   :  { %2507 = vmatpush3.msra.mxu0 %v462_v20 }
 0x16b   :  { %2508 = vmatprep.subr.mxu0 %v3020_v0 }
 0x16c   :  { %2509 = vmatpush3.msra.mxu0 %v461_v21 }
 0x16d   :  { %2510 = vmatprep.subr.mxu0 %v3020_v0 }
 0x16e   :  { %2511 = vmatpush3.msra.mxu0 %v460_v22 }
 0x16f   :  { %2512 = vmatprep.subr.mxu0 %v3020_v0 }
 0x170   :  { %2513 = vmatpush3.msra.mxu0 %v459_v23 }
 0x171   :  { %2514 = vmatprep.subr.mxu0 %v3020_v0 }
 0x172   :  { %2515 = vmatpush3.msra.mxu0 %v458_v24 }
 0x173   :  { %2516 = vmatprep.subr.mxu0 %v3020_v0 }
 0x174   :  { %2517 = vmatpush3.msra.mxu0 %v457_v25 }
 0x175   :  { %2518 = vmatprep.subr.mxu0 %v3020_v0 }
 0x176   :  { %2519 = vmatpush3.msra.mxu0 %v456_v26 }
 0x177   :  { %2558 = vmatprep.subr.mxu0 %v3020_v0 }
 0x221   :  { %v345_v28 = vpop.f32.mrf.mxu1 }
 0x222   :  { %v3149_v29 = vadd.f32 %v2171_v27, %v345_v28 }
 0x223   :  { %v2487_v30 = vpop.f32.mrf.mxu1 }
 0x224   :  { %v352_v31 = vand.u32 2139095040, %v3149_v29  ;;  %v349_v35 = vand.u32 2147483647, %v3149_v29  ;;  %vm351_vm6 = vcmp.lt.s32.totalorder %v3149_v29, 0  ;;  %vm441_vm11 = vweird.f32 %v3149_v29 }
 0x226   :  { %v353_v32 = vshrl.u32 %v352_v31, 23  ;;  %v356_v40 = vand.u32 8388607, %v349_v35  ;;  %vm350_vm7 = vcmp.le.f32.partialorder %v349_v35, 0.7853982 }
 0x228   :  { %v2172_v33 = vadd.s32 4294967169, %v353_v32  ;;  %v357_v56 = vor.u32 8388608, %v356_v40 }
 0x22a   :  { %v359_v34 = vadd.s32 1, %v2172_v33  ;;  %v397_v9 = vshll.u32 %v357_v56, 8 }
 0x22c   :  { %vm360_vm14 = vcmp.gt.s32.totalorder %v359_v34, 0 }
 0x22d   :  { %v361_v37 = vsel %vm360_vm14, %v359_v34, 0 }
 0x22e   :  { %v363_v38 = vand.u32 31, %v361_v37  ;;  %v362_v42 = vshrl.u32 %v361_v37, 5 }
 0x230   :  { %v364_v41 = vsub.s32 32, %v363_v38  ;;  %v366_v43 = vshll.u32 %v3025_v57, %v363_v38  ;;  %v369_v44 = vshll.u32 %v3026_v59, %v363_v38  ;;  %v372_v47 = vshll.u32 %v3027_v62, %v363_v38 }
 0x231   :  { %v375_v50 = vshll.u32 %v3022_v49, %v363_v38  ;;  %v378_v53 = vshll.u32 %v3023_v51, %v363_v38  ;;  %vm381_vm15 = vcmp.lt.s32.totalorder %v362_v42, 1  ;;  %vm384_vm1 = vcmp.lt.s32.totalorder %v362_v42, 4 }
 0x232   :  { %v367_v45 = vshrl.u32 %v3026_v59, %v364_v41  ;;  %v370_v46 = vshrl.u32 %v3027_v62, %v364_v41  ;;  %v373_v48 = vshrl.u32 %v3022_v49, %v364_v41  ;;  %v376_v52 = vshrl.u32 %v3023_v51, %v364_v41 }
 0x233   :  { %v379_v54 = vshrl.u32 %v3024_v55, %v364_v41  ;;  %v365_v5 = vshrl.u32 %v3025_v57, %v364_v41  ;;  %vm383_vm2 = vcmp.lt.s32.totalorder %v362_v42, 3  ;;  %vm382_vm3 = vcmp.lt.s32.totalorder %v362_v42, 2 }
 0x234   :  { %v368_v58 = vor.u32 %v367_v45, %v366_v43  ;;  %v371_v60 = vor.u32 %v370_v46, %v369_v44  ;;  %v374_v61 = vor.u32 %v373_v48, %v372_v47  ;;  %v377_v63 = vor.u32 %v376_v52, %v375_v50 }
 0x235   :  { %v380_v1 = vor.u32 %v379_v54, %v378_v53 }
 0x236   :  { %v386_v2 = vsel %vm384_vm1, %v374_v61, 2102212464  ;;  %v389_v3 = vsel %vm381_vm15, %v368_v58, %v371_v60  ;;  %v393_v4 = vsel %vm381_vm15, %v371_v60, %v374_v61  ;;  %v390_v6 = vsel %vm384_vm1, %v377_v63, 920167782 }
 0x237   :  { %v394_v7 = vsel %vm384_vm1, %v380_v1, 1326507024  ;;  %v391_v8 = vsel %vm383_vm2, %v374_v61, %v390_v6  ;;  %v385_v10 = vsel %vm381_vm15, %v365_v5, %v368_v58  ;;  %v387_v11 = vsel %vm383_vm2, %v371_v60, %v386_v2 }
 0x238   :  { %v395_v39 = vsel %vm383_vm2, %v377_v63, %v394_v7  ;;  %v392_v12 = vsel %vm382_vm3, %v389_v3, %v391_v8  ;;  %v388_v17 = vsel %vm382_vm3, %v385_v10, %v387_v11  ;;  %v672_v7 = vld [vmem:[#allocation5 + $0x1f8] sm:$0xff]  ;;  %v671_v8 = vld [vmem:[#allocation5 + $0x1f0] sm:$0xff]  ;;  %v666_v11 = vld [vmem:[#allocation5 + $0x1c8] sm:$0xff] }
 0x239   :  { %v396_v13 = vsel %vm382_vm3, %v393_v4, %v395_v39  ;;  %v3169_v36 = vmul.u32.u64.low %v397_v9, %v392_v12  ;;  %v3170_v16 = vmul.u32.u64.high %v397_v9, %v392_v12, %v3169_v36  ;;  %v404_v19 = vmul.u32 %v397_v9, %v388_v17  ;;  %2524 = vmatpush3.msra.mxu1 %v672_v7  ;;  %v670_v39 = vld [vmem:[#allocation5 + $0x1e8] sm:$0xff]  ;;  %v667_v10 = vld [vmem:[#allocation5 + $0x1d0] sm:$0xff]  ;;  %v665_v12 = vld [vmem:[#allocation5 + $0x1c0] sm:$0xff] }
 0x23a   :  { %v3166_v14 = vmul.u32.u64.low %v397_v9, %v396_v13  ;;  %v3167_v15 = vmul.u32.u64.high %v397_v9, %v396_v13, %v3166_v14  ;;  %2525 = vmatprep.subr.mxu1 %v3020_v0  ;;  %v669_v9 = vld [vmem:[#allocation5 + $0x1e0] sm:$0xff]  ;;  %v664_v13 = vld [vmem:[#allocation5 + $0x1b8] sm:$0xff]  ;;  %v659_v17 = vld [vmem:[#allocation5 + $0x190] sm:$0xff] }
 0x23b   :  { %v407_v18 = vadd.s32 1, %v3170_v16  ;;  %2526 = vmatpush3.msra.mxu1 %v671_v8  ;;  %v663_v14 = vld [vmem:[#allocation5 + $0x1b0] sm:$0xff] }
 0x23c   :  { %vm406_vm4 = vc.u32 %v3167_v15, %v3169_v36  ;;  %v405_v32 = vadd.s32 %v3169_v36, %v3167_v15  ;;  %2527 = vmatprep.subr.mxu1 %v3020_v0  ;;  %v662_v15 = vld [vmem:[#allocation5 + $0x1a8] sm:$0xff]  ;;  %v661_v36 = vld [vmem:[#allocation5 + $0x1a0] sm:$0xff] }
 0x23d   :  { %v408_v20 = vsel %vm406_vm4, %v407_v18, %v3170_v16  ;;  %2528 = vmatpush3.msra.mxu1 %v670_v39  ;;  %v660_v16 = vld [vmem:[#allocation5 + $0x198] sm:$0xff]  ;;  %v658_v18 = vld [vmem:[#allocation5 + $0x188] sm:$0xff] }
 0x23e   :  { %v409_v21 = vadd.s32 %v408_v20, %v404_v19  ;;  %2529 = vmatprep.subr.mxu1 %v3020_v0  ;;  %v657_v19 = vld [vmem:[#allocation5 + $0x180] sm:$0xff]  ;;  %v768_v20 = vld [vmem:[#allocation5 + $0x278] sm:$0xff] }
 0x23f   :  { %2530 = vmatpush3.msra.mxu1 %v669_v9 }
 0x240   :  { %v410_v22 = vadd.s32 536870912, %v409_v21  ;;  %2531 = vmatprep.subr.mxu1 %v3020_v0 }
 0x242   :  { %v411_v23 = vshrl.u32 %v410_v22, 30  ;;  %v766_v22 = vld [vmem:[#allocation5 + $0x268] sm:$0xff] }
 0x244   :  { %v412_v24 = vshll.u32 %v411_v23, 30  ;;  %v435_v48 = vsub.s32 4, %v411_v23 }
 0x246   :  { %v413_v25 = vsub.s32 %v409_v21, %v412_v24  ;;  %v436_v53 = vsel %vm351_vm6, %v435_v48, %v411_v23  ;;  %v767_v21 = vld [vmem:[#allocation5 + $0x270] sm:$0xff]  ;;  %v765_v23 = vld [vmem:[#allocation5 + $0x260] sm:$0xff]  ;;  %v764_v24 = vld [vmem:[#allocation5 + $0x258] sm:$0xff] }
 0x247   :  { %v438_v54 = vsel %vm350_vm7, 0, %v436_v53 }
 0x248   :  { %v415_v26 = vsub.s32 0, %v413_v25  ;;  %v442_v56 = vadd.s32 3, %v438_v54 }
 0x24a   :  { %v2173_v27 = vmin.u32 %v415_v26, %v413_v25  ;;  %v443_v58 = vand.u32 3, %v442_v56  ;;  %v762_v26 = vld [vmem:[#allocation5 + $0x248] sm:$0xff] }
 0x24c   :  { %v417_v28 = vclz %v2173_v27  ;;  %vm448_vm8 = vcmp.eq.s32.totalorder %v443_v58, 2  ;;  %vm445_vm9 = vcmp.eq.s32.totalorder %v443_v58, 0  ;;  %vm444_vm10 = vcmp.lt.s32.totalorder %v443_v58, 2  ;;  %v761_v27 = vld [vmem:[#allocation5 + $0x240] sm:$0xff] }
 0x24e   :  { %v2174_v30 = vadd.s32 4294967294, %v417_v28  ;;  %v760_v28 = vld [vmem:[#allocation5 + $0x238] sm:$0xff] }
 0x250   :  { %vm2175_vm5 = vcmp.lt.s32.totalorder %v2174_v30, 0 }
 0x251   :  { %v420_v31 = vsel %vm2175_vm5, 0, %v2174_v30  ;;  %v759_v30 = vld [vmem:[#allocation5 + $0x230] sm:$0xff] }
 0x252   :  { %v421_v33 = vsub.s32 32, %v420_v31  ;;  %v425_v34 = vsub.s32 4294967266, %v420_v31  ;;  %v422_v37 = vshll.u32 %v413_v25, %v420_v31  ;;  %v763_v25 = vld [vmem:[#allocation5 + $0x250] sm:$0xff]  ;;  %v758_v31 = vld [vmem:[#allocation5 + $0x228] sm:$0xff] }
 0x254   :  { %v423_v38 = vshrl.u32 %v405_v32, %v421_v33  ;;  %v426_v40 = vadd.s32 127, %v425_v34  ;;  %v757_v32 = vld [vmem:[#allocation5 + $0x220] sm:$0xff]  ;;  %v756_v33 = vld [vmem:[#allocation5 + $0x218] sm:$0xff] }
 0x255   :  { %v2176_v34 = vld [vmem:[#allocation7 + $0x2] ss:$0 sm:$0xff] }
 0x256   :  { %v424_v41 = vor.u32 %v423_v38, %v422_v37  ;;  %v427_v42 = vshll.u32 %v426_v40, 23 }
 0x258   :  { %v428_v43 = vor.u32 4788187, %v427_v42  ;;  %v431_v45 = vcvt.s32.f32 %v424_v41 }
 0x25a   :  { %v429_v44 = vand.u32 2147483647, %v428_v43 }
 0x25c   :  { %v432_v46 = vmul.f32 %v431_v45, %v429_v44 }
 0x25e   :  { %v433_v47 = vxor.u32 2147483648, %v432_v46 }
 0x260   :  { %v434_v50 = vsel %vm351_vm6, %v433_v47, %v432_v46 }
 0x261   :  { %v437_v52 = vsel %vm350_vm7, %v3149_v29, %v434_v50 }
 0x262   :  { %2894 = vcosq.f32 %v437_v52 }
 0x263   :  { %2896 = vsinq.f32 %v437_v52 }
 0x26f   :  { %v2895_v60 = vpop.eup %2894 }
 0x270   :  { %v2897_v61 = vpop.eup %2896  ;;  %v449_v63 = vxor.u32 2147483648, %v2895_v60 }
 0x271   :  { %v446_v1 = vxor.u32 2147483648, %v2897_v61 }
 0x272   :  { %v450_v2 = vsel %vm448_vm8, %v449_v63, %v2897_v61 }
 0x273   :  { %v447_v3 = vsel %vm445_vm9, %v2895_v60, %v446_v1 }
 0x274   :  { %v451_v35 = vsel %vm444_vm10, %v447_v3, %v450_v2 }
 0x275   :  { %v452_v4 = vsel %vm441_vm11, nan, %v451_v35 }
 0x276   :  { %v453_v5 = vmul.f32 %v452_v4, %v452_v4 }
 0x278   :  { %v454_v6 = vadd.f32 %v453_v5, %v3149_v29  ;;  %v668_v29 = vld [vmem:[#allocation5 + $0x1d8] sm:$0xff] }
 0x279   :  { %2532 = vmatpush3.msra.mxu1 %v668_v29 }
 0x27a   :  { %2521 = vmatmul.mubr.f32.vlgmr.msra.gmra.mxu0 %v454_v6  ;;  %2533 = vmatprep.subr.mxu1 %v3020_v0 }
 0x27b   :  { %2590 = vmatprep.mubr.msk.f32.mxu0 %vm3021_vm0, %v3020_v0  ;;  %2534 = vmatpush3.msra.mxu1 %v667_v10 }
 0x27c   :  { %2535 = vmatprep.subr.mxu1 %v3020_v0  ;;  %2559 = vmatpush3.msra.mxu0 %v768_v20 }
 0x27d   :  { %2536 = vmatpush3.msra.mxu1 %v666_v11  ;;  %2560 = vmatprep.subr.mxu0 %v3020_v0 }
 0x27e   :  { %2537 = vmatprep.subr.mxu1 %v3020_v0  ;;  %2561 = vmatpush3.msra.mxu0 %v767_v21 }
 0x27f   :  { %2538 = vmatpush3.msra.mxu1 %v665_v12  ;;  %2562 = vmatprep.subr.mxu0 %v3020_v0 }
 0x280   :  { %2539 = vmatprep.subr.mxu1 %v3020_v0  ;;  %2563 = vmatpush3.msra.mxu0 %v766_v22 }
 0x281   :  { %2540 = vmatpush3.msra.mxu1 %v664_v13  ;;  %2564 = vmatprep.subr.mxu0 %v3020_v0 }
 0x282   :  { %2541 = vmatprep.subr.mxu1 %v3020_v0  ;;  %2565 = vmatpush3.msra.mxu0 %v765_v23 }
 0x283   :  { %2542 = vmatpush3.msra.mxu1 %v663_v14  ;;  %2566 = vmatprep.subr.mxu0 %v3020_v0 }
 0x284   :  { %2543 = vmatprep.subr.mxu1 %v3020_v0  ;;  %2567 = vmatpush3.msra.mxu0 %v764_v24 }
 0x285   :  { %2544 = vmatpush3.msra.mxu1 %v662_v15  ;;  %2568 = vmatprep.subr.mxu0 %v3020_v0 }
 0x286   :  { %2545 = vmatprep.subr.mxu1 %v3020_v0  ;;  %2569 = vmatpush3.msra.mxu0 %v763_v25 }
 0x287   :  { %2546 = vmatpush3.msra.mxu1 %v661_v36  ;;  %2570 = vmatprep.subr.mxu0 %v3020_v0 }
 0x288   :  { %2547 = vmatprep.subr.mxu1 %v3020_v0  ;;  %2571 = vmatpush3.msra.mxu0 %v762_v26 }
 0x289   :  { %2548 = vmatpush3.msra.mxu1 %v660_v16  ;;  %2572 = vmatprep.subr.mxu0 %v3020_v0 }
 0x28a   :  { %2549 = vmatprep.subr.mxu1 %v3020_v0  ;;  %2573 = vmatpush3.msra.mxu0 %v761_v27 }
 0x28b   :  { %2550 = vmatpush3.msra.mxu1 %v659_v17  ;;  %2574 = vmatprep.subr.mxu0 %v3020_v0 }
 0x28c   :  { %2551 = vmatprep.subr.mxu1 %v3020_v0  ;;  %2575 = vmatpush3.msra.mxu0 %v760_v28 }
 0x28d   :  { %2552 = vmatpush3.msra.mxu1 %v658_v18  ;;  %2576 = vmatprep.subr.mxu0 %v3020_v0 }
 0x28e   :  { %2553 = vmatprep.subr.mxu1 %v3020_v0  ;;  %2577 = vmatpush3.msra.mxu0 %v759_v30 }
 0x28f   :  { %2554 = vmatpush3.msra.mxu1 %v657_v19  ;;  %2578 = vmatprep.subr.mxu0 %v3020_v0 }
 0x290   :  { %2593 = vmatprep.subr.mxu1 %v3020_v0  ;;  %2579 = vmatpush3.msra.mxu0 %v758_v31 }
 0x291   :  { %2580 = vmatprep.subr.mxu0 %v3020_v0 }
 0x292   :  { %2581 = vmatpush3.msra.mxu0 %v757_v32 }
 0x293   :  { %2582 = vmatprep.subr.mxu0 %v3020_v0 }
 0x294   :  { %2583 = vmatpush3.msra.mxu0 %v756_v33 }
 0x295   :  { %2584 = vmatprep.subr.mxu0 %v3020_v0 }
 0x33a   :  { %v546_v37 = vpop.f32.mrf.mxu0 }
 0x33b   :  { %v3213_v38 = vadd.f32 %v2176_v34, %v546_v37 }
 0x33c   :  { %v2522_v40 = vpop.f32.mrf.mxu0 }
 0x33d   :  { %v553_v41 = vand.u32 2139095040, %v3213_v38  ;;  %v550_v45 = vand.u32 2147483647, %v3213_v38  ;;  %vm552_vm4 = vcmp.lt.s32.totalorder %v3213_v38, 0  ;;  %vm642_vm9 = vweird.f32 %v3213_v38 }
 0x33f   :  { %v554_v42 = vshrl.u32 %v553_v41, 23  ;;  %v557_v48 = vand.u32 8388607, %v550_v45  ;;  %vm551_vm5 = vcmp.le.f32.partialorder %v550_v45, 0.7853982 }
 0x341   :  { %v2177_v43 = vadd.s32 4294967169, %v554_v42  ;;  %v558_v35 = vor.u32 8388608, %v557_v48 }
 0x343   :  { %v560_v44 = vadd.s32 1, %v2177_v43  ;;  %v598_v15 = vshll.u32 %v558_v35, 8 }
 0x345   :  { %vm561_vm12 = vcmp.gt.s32.totalorder %v560_v44, 0 }
 0x346   :  { %v562_v46 = vsel %vm561_vm12, %v560_v44, 0 }
 0x347   :  { %v564_v47 = vand.u32 31, %v562_v46  ;;  %v563_v52 = vshrl.u32 %v562_v46, 5 }
 0x349   :  { %v565_v50 = vsub.s32 32, %v564_v47  ;;  %v567_v53 = vshll.u32 %v3025_v57, %v564_v47  ;;  %v570_v54 = vshll.u32 %v3026_v59, %v564_v47  ;;  %v573_v60 = vshll.u32 %v3027_v62, %v564_v47 }
 0x34a   :  { %v576_v63 = vshll.u32 %v3022_v49, %v564_v47  ;;  %v579_v2 = vshll.u32 %v3023_v51, %v564_v47  ;;  %vm582_vm13 = vcmp.lt.s32.totalorder %v563_v52, 1  ;;  %vm585_vm14 = vcmp.lt.s32.totalorder %v563_v52, 4 }
 0x34b   :  { %v568_v56 = vshrl.u32 %v3026_v59, %v565_v50  ;;  %v571_v58 = vshrl.u32 %v3027_v62, %v565_v50  ;;  %v574_v61 = vshrl.u32 %v3022_v49, %v565_v50  ;;  %v577_v1 = vshrl.u32 %v3023_v51, %v565_v50 }
 0x34c   :  { %v580_v3 = vshrl.u32 %v3024_v55, %v565_v50  ;;  %v566_v10 = vshrl.u32 %v3025_v57, %v565_v50  ;;  %vm584_vm15 = vcmp.lt.s32.totalorder %v563_v52, 3  ;;  %vm583_vm1 = vcmp.lt.s32.totalorder %v563_v52, 2 }
 0x34d   :  { %v569_v4 = vor.u32 %v568_v56, %v567_v53  ;;  %v572_v5 = vor.u32 %v571_v58, %v570_v54  ;;  %v575_v6 = vor.u32 %v574_v61, %v573_v60  ;;  %v578_v7 = vor.u32 %v577_v1, %v576_v63 }
 0x34e   :  { %v581_v8 = vor.u32 %v580_v3, %v579_v2 }
 0x34f   :  { %v587_v39 = vsel %vm585_vm14, %v575_v6, 2102212464  ;;  %v590_v9 = vsel %vm582_vm13, %v569_v4, %v572_v5  ;;  %v594_v29 = vsel %vm582_vm13, %v572_v5, %v575_v6  ;;  %v591_v11 = vsel %vm585_vm14, %v578_v7, 920167782 }
 0x350   :  { %v595_v12 = vsel %vm585_vm14, %v581_v8, 1326507024  ;;  %v592_v13 = vsel %vm584_vm15, %v575_v6, %v591_v11  ;;  %v586_v36 = vsel %vm582_vm13, %v566_v10, %v569_v4  ;;  %v588_v16 = vsel %vm584_vm15, %v572_v5, %v587_v39 }
 0x351   :  { %v596_v14 = vsel %vm584_vm15, %v578_v7, %v595_v12  ;;  %v593_v17 = vsel %vm583_vm1, %v590_v9, %v592_v13  ;;  %v589_v23 = vsel %vm583_vm1, %v586_v36, %v588_v16  ;;  %v755_v12 = vld [vmem:[#allocation5 + $0x210] sm:$0xff]  ;;  %v754_v13 = vld [vmem:[#allocation5 + $0x208] sm:$0xff] }
 0x352   :  { %v597_v18 = vsel %vm583_vm1, %v594_v29, %v596_v14  ;;  %v3233_v21 = vmul.u32.u64.low %v598_v15, %v593_v17  ;;  %v3234_v22 = vmul.u32.u64.high %v598_v15, %v593_v17, %v3233_v21  ;;  %v605_v25 = vmul.u32 %v598_v15, %v589_v23  ;;  %2585 = vmatpush3.msra.mxu0 %v755_v12  ;;  %v753_v14 = vld [vmem:[#allocation5 + $0x200] sm:$0xff]  ;;  %v2926_v17 = vld [vmem:[#allocation2] sm:$0xff] }
 0x353   :  { %v3230_v19 = vmul.u32.u64.low %v598_v15, %v597_v18  ;;  %v3231_v20 = vmul.u32.u64.high %v598_v15, %v597_v18, %v3230_v19  ;;  %2586 = vmatprep.subr.mxu0 %v3020_v0  ;;  %v2181_v15 = vld [vmem:[#allocation7 + $0x3] ss:$0 sm:$0xff]  ;;  %v965_v23 = vld [vmem:[#allocation5 + $0x2d8] sm:$0xff] }
 0x354   :  { %v608_v24 = vadd.s32 1, %v3234_v22  ;;  %2587 = vmatpush3.msra.mxu0 %v754_v13  ;;  %v969_v19 = vld [vmem:[#allocation5 + $0x2f8] sm:$0xff] }
 0x355   :  { %vm607_vm2 = vc.u32 %v3231_v20, %v3233_v21  ;;  %v606_v42 = vadd.s32 %v3233_v21, %v3231_v20  ;;  %2588 = vmatprep.subr.mxu0 %v3020_v0  ;;  %v968_v20 = vld [vmem:[#allocation5 + $0x2f0] sm:$0xff]  ;;  %v967_v21 = vld [vmem:[#allocation5 + $0x2e8] sm:$0xff] }
 0x356   :  { %v609_v26 = vsel %vm607_vm2, %v608_v24, %v3234_v22  ;;  %2589 = vmatpush3.msra.mxu0 %v753_v14  ;;  %v966_v22 = vld [vmem:[#allocation5 + $0x2e0] sm:$0xff]  ;;  %v964_v24 = vld [vmem:[#allocation5 + $0x2d0] sm:$0xff] }
 0x357   :  { %v610_v27 = vadd.s32 %v609_v26, %v605_v25  ;;  %2628 = vmatprep.subr.mxu0 %v3020_v0  ;;  %v963_v25 = vld [vmem:[#allocation5 + $0x2c8] sm:$0xff]  ;;  %v962_v26 = vld [vmem:[#allocation5 + $0x2c0] sm:$0xff] }
 0x359   :  { %v611_v28 = vadd.s32 536870912, %v610_v27 }
 0x35b   :  { %v612_v30 = vshrl.u32 %v611_v28, 30  ;;  %v960_v28 = vld [vmem:[#allocation5 + $0x2b0] sm:$0xff] }
 0x35d   :  { %v613_v31 = vshll.u32 %v612_v30, 30  ;;  %v636_v61 = vsub.s32 4, %v612_v30 }
 0x35f   :  { %v614_v32 = vsub.s32 %v610_v27, %v613_v31  ;;  %v637_v2 = vsel %vm552_vm4, %v636_v61, %v612_v30  ;;  %v961_v27 = vld [vmem:[#allocation5 + $0x2b8] sm:$0xff]  ;;  %v959_v30 = vld [vmem:[#allocation5 + $0x2a8] sm:$0xff]  ;;  %v958_v31 = vld [vmem:[#allocation5 + $0x2a0] sm:$0xff] }
 0x360   :  { %v639_v3 = vsel %vm551_vm5, 0, %v637_v2 }
 0x361   :  { %v616_v33 = vsub.s32 0, %v614_v32  ;;  %v643_v35 = vadd.s32 3, %v639_v3 }
 0x363   :  { %v2178_v34 = vmin.u32 %v616_v33, %v614_v32  ;;  %v644_v4 = vand.u32 3, %v643_v35  ;;  %v956_v33 = vld [vmem:[#allocation5 + $0x290] sm:$0xff] }
 0x365   :  { %v618_v37 = vclz %v2178_v34  ;;  %vm649_vm6 = vcmp.eq.s32.totalorder %v644_v4, 2  ;;  %vm646_vm7 = vcmp.eq.s32.totalorder %v644_v4, 0  ;;  %vm645_vm8 = vcmp.lt.s32.totalorder %v644_v4, 2  ;;  %v955_v34 = vld [vmem:[#allocation5 + $0x288] sm:$0xff] }
 0x367   :  { %v2179_v40 = vadd.s32 4294967294, %v618_v37  ;;  %v954_v37 = vld [vmem:[#allocation5 + $0x280] sm:$0xff] }
 0x369   :  { %vm2180_vm3 = vcmp.lt.s32.totalorder %v2179_v40, 0 }
 0x36a   :  { %v621_v41 = vsel %vm2180_vm3, 0, %v2179_v40  ;;  %v2182_v40 = vld [vmem:[#allocation7 + $0x4] ss:$0 sm:$0xff] }
 0x36b   :  { %v622_v43 = vsub.s32 32, %v621_v41  ;;  %v626_v44 = vsub.s32 4294967266, %v621_v41  ;;  %v623_v46 = vshll.u32 %v614_v32, %v621_v41  ;;  %v957_v32 = vld [vmem:[#allocation5 + $0x298] sm:$0xff] }
 0x36d   :  { %v624_v47 = vshrl.u32 %v606_v42, %v622_v43  ;;  %v627_v48 = vadd.s32 127, %v626_v44 }
 0x36f   :  { %v625_v50 = vor.u32 %v624_v47, %v623_v46  ;;  %v628_v52 = vshll.u32 %v627_v48, 23 }
 0x371   :  { %v629_v53 = vor.u32 4788187, %v628_v52  ;;  %v632_v56 = vcvt.s32.f32 %v625_v50 }
 0x373   :  { %v630_v54 = vand.u32 2147483647, %v629_v53 }
 0x375   :  { %v633_v58 = vmul.f32 %v632_v56, %v630_v54 }
 0x377   :  { %v634_v60 = vxor.u32 2147483648, %v633_v58 }
 0x379   :  { %v635_v63 = vsel %vm552_vm4, %v634_v60, %v633_v58 }
 0x37a   :  { %v638_v1 = vsel %vm551_vm5, %v3213_v38, %v635_v63 }
 0x37b   :  { %2898 = vcosq.f32 %v638_v1 }
 0x37c   :  { %2900 = vsinq.f32 %v638_v1 }
 0x388   :  { %v2899_v5 = vpop.eup %2898 }
 0x389   :  { %v2901_v6 = vpop.eup %2900  ;;  %v650_v7 = vxor.u32 2147483648, %v2899_v5 }
 0x38a   :  { %v647_v8 = vxor.u32 2147483648, %v2901_v6 }
 0x38b   :  { %v651_v39 = vsel %vm649_vm6, %v650_v7, %v2901_v6 }
 0x38c   :  { %v648_v9 = vsel %vm646_vm7, %v2899_v5, %v647_v8 }
 0x38d   :  { %v652_v45 = vsel %vm645_vm8, %v648_v9, %v651_v39 }
 0x38e   :  { %v653_v29 = vsel %vm642_vm9, nan, %v652_v45 }
 0x38f   :  { %v654_v10 = vmul.f32 %v653_v29, %v653_v29 }
 0x391   :  { %v655_v11 = vadd.f32 %v654_v10, %v3213_v38 }
 0x393   :  { %2556 = vmatmul.mubr.f32.vlgmr.msra.gmra.mxu1 %v655_v11 }
 0x394   :  { %2625 = vmatprep.mubr.msk.f32.mxu1 %vm3021_vm0, %v3020_v0  ;;  %2594 = vmatpush3.msra.mxu1 %v969_v19 }
 0x395   :  { %2595 = vmatprep.subr.mxu1 %v3020_v0 }
 0x396   :  { %2596 = vmatpush3.msra.mxu1 %v968_v20 }
 0x397   :  { %2597 = vmatprep.subr.mxu1 %v3020_v0 }
 0x398   :  { %2598 = vmatpush3.msra.mxu1 %v967_v21 }
 0x399   :  { %2599 = vmatprep.subr.mxu1 %v3020_v0 }
 0x39a   :  { %2600 = vmatpush3.msra.mxu1 %v966_v22 }
 0x39b   :  { %2601 = vmatprep.subr.mxu1 %v3020_v0 }
 0x39c   :  { %2602 = vmatpush3.msra.mxu1 %v965_v23 }
 0x39d   :  { %2603 = vmatprep.subr.mxu1 %v3020_v0 }
 0x39e   :  { %2604 = vmatpush3.msra.mxu1 %v964_v24 }
 0x39f   :  { %2605 = vmatprep.subr.mxu1 %v3020_v0 }
 0x3a0   :  { %2606 = vmatpush3.msra.mxu1 %v963_v25 }
 0x3a1   :  { %2607 = vmatprep.subr.mxu1 %v3020_v0 }
 0x3a2   :  { %2608 = vmatpush3.msra.mxu1 %v962_v26 }
 0x3a3   :  { %2609 = vmatprep.subr.mxu1 %v3020_v0 }
 0x3a4   :  { %2610 = vmatpush3.msra.mxu1 %v961_v27 }
 0x3a5   :  { %2611 = vmatprep.subr.mxu1 %v3020_v0 }
 0x3a6   :  { %2612 = vmatpush3.msra.mxu1 %v960_v28 }
 0x3a7   :  { %2613 = vmatprep.subr.mxu1 %v3020_v0 }
 0x3a8   :  { %2614 = vmatpush3.msra.mxu1 %v959_v30 }
 0x3a9   :  { %2615 = vmatprep.subr.mxu1 %v3020_v0 }
 0x3aa   :  { %2616 = vmatpush3.msra.mxu1 %v958_v31 }
 0x3ab   :  { %2617 = vmatprep.subr.mxu1 %v3020_v0 }
 0x3ac   :  { %2618 = vmatpush3.msra.mxu1 %v957_v32 }
 0x3ad   :  { %2619 = vmatprep.subr.mxu1 %v3020_v0 }
 0x3ae   :  { %2620 = vmatpush3.msra.mxu1 %v956_v33 }
 0x3af   :  { %2621 = vmatprep.subr.mxu1 %v3020_v0 }
 0x3b0   :  { %2622 = vmatpush3.msra.mxu1 %v955_v34 }
 0x3b1   :  { %2623 = vmatprep.subr.mxu1 %v3020_v0 }
 0x3b2   :  { %2624 = vmatpush3.msra.mxu1 %v954_v37 }
 0x3b3   :  { %2663 = vmatprep.subr.mxu1 %v3020_v0 }
 0x453   :  { %v747_v36 = vpop.f32.mrf.mxu1 }
 0x454   :  { %v748_v16 = vadd.f32 %v2181_v15, %v747_v36 }
 0x455   :  { %v2557_v38 = vpop.f32.mrf.mxu1 }
 0x456   :  { %v3251_v18 = vadd.f32 %v2926_v17, %v748_v16 }
 0x458   :  { %2591 = vmatmul.mubr.f32.vlgmr.msra.gmra.mxu0 %v3251_v18 }
 0x459   :  { %2660 = vmatprep.mubr.msk.f32.mxu0 %vm3021_vm0, %v3020_v0 }
 0x518   :  { %v843_v41 = vpop.f32.mrf.mxu0 }
 0x519   :  { %v3272_v42 = vadd.f32 %v2182_v40, %v843_v41 }
 0x51a   :  { %v2592_v43 = vpop.f32.mrf.mxu0 }
 0x51b   :  { %v850_v44 = vand.u32 2139095040, %v3272_v42  ;;  %v847_v50 = vand.u32 2147483647, %v3272_v42  ;;  %vm849_vm2 = vcmp.lt.s32.totalorder %v3272_v42, 0  ;;  %vm939_vm7 = vweird.f32 %v3272_v42 }
 0x51d   :  { %v851_v46 = vshrl.u32 %v850_v44, 23  ;;  %v854_v54 = vand.u32 8388607, %v847_v50  ;;  %vm848_vm3 = vcmp.le.f32.partialorder %v847_v50, 0.7853982 }
 0x51f   :  { %v2183_v47 = vadd.s32 4294967169, %v851_v46  ;;  %v855_v7 = vor.u32 8388608, %v854_v54 }
 0x521   :  { %v857_v48 = vadd.s32 1, %v2183_v47  ;;  %v895_v38 = vshll.u32 %v855_v7, 8 }
 0x523   :  { %vm858_vm10 = vcmp.gt.s32.totalorder %v857_v48, 0 }
 0x524   :  { %v859_v52 = vsel %vm858_vm10, %v857_v48, 0 }
 0x525   :  { %v861_v53 = vand.u32 31, %v859_v52  ;;  %v860_v58 = vshrl.u32 %v859_v52, 5 }
 0x527   :  { %v862_v56 = vsub.s32 32, %v861_v53  ;;  %v864_v60 = vshll.u32 %v3025_v57, %v861_v53  ;;  %v867_v61 = vshll.u32 %v3026_v59, %v861_v53  ;;  %v870_v2 = vshll.u32 %v3027_v62, %v861_v53 }
 0x528   :  { %v873_v35 = vshll.u32 %v3022_v49, %v861_v53  ;;  %v876_v5 = vshll.u32 %v3023_v51, %v861_v53  ;;  %vm879_vm11 = vcmp.lt.s32.totalorder %v860_v58, 1  ;;  %vm882_vm12 = vcmp.lt.s32.totalorder %v860_v58, 4 }
 0x529   :  { %v865_v63 = vshrl.u32 %v3026_v59, %v862_v56  ;;  %v868_v1 = vshrl.u32 %v3027_v62, %v862_v56  ;;  %v871_v3 = vshrl.u32 %v3022_v49, %v862_v56  ;;  %v874_v4 = vshrl.u32 %v3023_v51, %v862_v56 }
 0x52a   :  { %v877_v6 = vshrl.u32 %v3024_v55, %v862_v56  ;;  %v863_v13 = vshrl.u32 %v3025_v57, %v862_v56  ;;  %vm881_vm13 = vcmp.lt.s32.totalorder %v860_v58, 3  ;;  %vm880_vm14 = vcmp.lt.s32.totalorder %v860_v58, 2 }
 0x52b   :  { %v866_v8 = vor.u32 %v865_v63, %v864_v60  ;;  %v869_v39 = vor.u32 %v868_v1, %v867_v61  ;;  %v872_v9 = vor.u32 %v871_v3, %v870_v2  ;;  %v875_v45 = vor.u32 %v874_v4, %v873_v35 }
 0x52c   :  { %v878_v29 = vor.u32 %v877_v6, %v876_v5 }
 0x52d   :  { %v884_v10 = vsel %vm882_vm12, %v872_v9, 2102212464  ;;  %v887_v11 = vsel %vm879_vm11, %v866_v8, %v869_v39  ;;  %v891_v12 = vsel %vm879_vm11, %v869_v39, %v872_v9  ;;  %v888_v14 = vsel %vm882_vm12, %v875_v45, 920167782 }
 0x52e   :  { %v892_v15 = vsel %vm882_vm12, %v878_v29, 1326507024  ;;  %v889_v36 = vsel %vm881_vm13, %v872_v9, %v888_v14  ;;  %v883_v17 = vsel %vm879_vm11, %v863_v13, %v866_v8  ;;  %v885_v19 = vsel %vm881_vm13, %v869_v39, %v884_v10 }
 0x52f   :  { %v893_v16 = vsel %vm881_vm13, %v875_v45, %v892_v15  ;;  %v890_v20 = vsel %vm880_vm14, %v887_v11, %v889_v36  ;;  %v886_v26 = vsel %vm880_vm14, %v883_v17, %v885_v19  ;;  %v1170_v36 = vld [vmem:[#allocation5 + $0x378] sm:$0xff]  ;;  %v1167_v17 = vld [vmem:[#allocation5 + $0x360] sm:$0xff]  ;;  %v1165_v19 = vld [vmem:[#allocation5 + $0x350] sm:$0xff] }
 0x530   :  { %v894_v21 = vsel %vm880_vm14, %v891_v12, %v893_v16  ;;  %v3292_v24 = vmul.u32.u64.low %v895_v38, %v890_v20  ;;  %v3293_v25 = vmul.u32.u64.high %v895_v38, %v890_v20, %v3292_v24  ;;  %v902_v28 = vmul.u32 %v895_v38, %v886_v26  ;;  %2629 = vmatpush3.msra.mxu0 %v1170_v36  ;;  %v1169_v16 = vld [vmem:[#allocation5 + $0x370] sm:$0xff]  ;;  %v1164_v20 = vld [vmem:[#allocation5 + $0x348] sm:$0xff]  ;;  %v1158_v26 = vld [vmem:[#allocation5 + $0x318] sm:$0xff] }
 0x531   :  { %v3289_v22 = vmul.u32.u64.low %v895_v38, %v894_v21  ;;  %v3290_v23 = vmul.u32.u64.high %v895_v38, %v894_v21, %v3289_v22  ;;  %2630 = vmatprep.subr.mxu0 %v3020_v0  ;;  %v1168_v38 = vld [vmem:[#allocation5 + $0x368] sm:$0xff]  ;;  %v1163_v21 = vld [vmem:[#allocation5 + $0x340] sm:$0xff] }
 0x532   :  { %v905_v27 = vadd.s32 1, %v3293_v25  ;;  %2631 = vmatpush3.msra.mxu0 %v1169_v16  ;;  %v1162_v22 = vld [vmem:[#allocation5 + $0x338] sm:$0xff] }
 0x533   :  { %vm904_vm15 = vc.u32 %v3290_v23, %v3292_v24  ;;  %v903_v47 = vadd.s32 %v3292_v24, %v3290_v23  ;;  %2632 = vmatprep.subr.mxu0 %v3020_v0  ;;  %v1161_v23 = vld [vmem:[#allocation5 + $0x330] sm:$0xff]  ;;  %v1160_v24 = vld [vmem:[#allocation5 + $0x328] sm:$0xff] }
 0x534   :  { %v906_v30 = vsel %vm904_vm15, %v905_v27, %v3293_v25  ;;  %2633 = vmatpush3.msra.mxu0 %v1168_v38  ;;  %v1159_v25 = vld [vmem:[#allocation5 + $0x320] sm:$0xff]  ;;  %v1157_v27 = vld [vmem:[#allocation5 + $0x310] sm:$0xff] }
 0x535   :  { %v907_v31 = vadd.s32 %v906_v30, %v902_v28  ;;  %2634 = vmatprep.subr.mxu0 %v3020_v0  ;;  %v1156_v28 = vld [vmem:[#allocation5 + $0x308] sm:$0xff]  ;;  %v1155_v30 = vld [vmem:[#allocation5 + $0x300] sm:$0xff] }
 0x536   :  { %2635 = vmatpush3.msra.mxu0 %v1167_v17 }
 0x537   :  { %v908_v32 = vadd.s32 536870912, %v907_v31  ;;  %2636 = vmatprep.subr.mxu0 %v3020_v0 }
 0x539   :  { %v909_v33 = vshrl.u32 %v908_v32, 30 }
 0x53b   :  { %v910_v34 = vshll.u32 %v909_v33, 30  ;;  %v933_v35 = vsub.s32 4, %v909_v33 }
 0x53d   :  { %v911_v37 = vsub.s32 %v907_v31, %v910_v34  ;;  %v934_v6 = vsel %vm849_vm2, %v933_v35, %v909_v33  ;;  %v2187_v31 = vld [vmem:[#allocation7 + $0x5] ss:$0 sm:$0xff] }
 0x53e   :  { %v936_v7 = vsel %vm848_vm3, 0, %v934_v6 }
 0x53f   :  { %v913_v40 = vsub.s32 0, %v911_v37  ;;  %v940_v8 = vadd.s32 3, %v936_v7 }
 0x541   :  { %v2184_v41 = vmin.u32 %v913_v40, %v911_v37  ;;  %v941_v39 = vand.u32 3, %v940_v8 }
 0x543   :  { %v915_v43 = vclz %v2184_v41  ;;  %vm946_vm4 = vcmp.eq.s32.totalorder %v941_v39, 2  ;;  %vm943_vm5 = vcmp.eq.s32.totalorder %v941_v39, 0  ;;  %vm942_vm6 = vcmp.lt.s32.totalorder %v941_v39, 2 }
 0x545   :  { %v2185_v44 = vadd.s32 4294967294, %v915_v43 }
 0x547   :  { %vm2186_vm1 = vcmp.lt.s32.totalorder %v2185_v44, 0 }
 0x548   :  { %v918_v46 = vsel %vm2186_vm1, 0, %v2185_v44 }
 0x549   :  { %v919_v48 = vsub.s32 32, %v918_v46  ;;  %v923_v52 = vsub.s32 4294967266, %v918_v46  ;;  %v920_v53 = vshll.u32 %v911_v37, %v918_v46 }
 0x54b   :  { %v921_v54 = vshrl.u32 %v903_v47, %v919_v48  ;;  %v924_v56 = vadd.s32 127, %v923_v52 }
 0x54d   :  { %v922_v58 = vor.u32 %v921_v54, %v920_v53  ;;  %v925_v60 = vshll.u32 %v924_v56, 23 }
 0x54f   :  { %v926_v61 = vor.u32 4788187, %v925_v60  ;;  %v929_v1 = vcvt.s32.f32 %v922_v58 }
 0x551   :  { %v927_v63 = vand.u32 2147483647, %v926_v61 }
 0x553   :  { %v930_v2 = vmul.f32 %v929_v1, %v927_v63 }
 0x555   :  { %v931_v3 = vxor.u32 2147483648, %v930_v2 }
 0x557   :  { %v932_v4 = vsel %vm849_vm2, %v931_v3, %v930_v2 }
 0x558   :  { %v935_v5 = vsel %vm848_vm3, %v3272_v42, %v932_v4 }
 0x559   :  { %2902 = vcosq.f32 %v935_v5 }
 0x55a   :  { %2904 = vsinq.f32 %v935_v5 }
 0x566   :  { %v2903_v9 = vpop.eup %2902 }
 0x567   :  { %v2905_v45 = vpop.eup %2904  ;;  %v947_v29 = vxor.u32 2147483648, %v2903_v9 }
 0x568   :  { %v944_v10 = vxor.u32 2147483648, %v2905_v45 }
 0x569   :  { %v948_v11 = vsel %vm946_vm4, %v947_v29, %v2905_v45 }
 0x56a   :  { %v945_v12 = vsel %vm943_vm5, %v2903_v9, %v944_v10 }
 0x56b   :  { %v949_v50 = vsel %vm942_vm6, %v945_v12, %v948_v11 }
 0x56c   :  { %v950_v13 = vsel %vm939_vm7, nan, %v949_v50 }
 0x56d   :  { %v951_v14 = vmul.f32 %v950_v13, %v950_v13 }
 0x56f   :  { %v952_v15 = vadd.f32 %v951_v14, %v3272_v42  ;;  %v1166_v42 = vld [vmem:[#allocation5 + $0x358] sm:$0xff] }
 0x570   :  { %2637 = vmatpush3.msra.mxu0 %v1166_v42 }
 0x571   :  { %2626 = vmatmul.mubr.f32.vlgmr.msra.gmra.mxu1 %v952_v15  ;;  %2638 = vmatprep.subr.mxu0 %v3020_v0 }
 0x572   :  { %2695 = vmatprep.mubr.msk.f32.mxu1 %vm3021_vm0, %v3020_v0  ;;  %2639 = vmatpush3.msra.mxu0 %v1165_v19 }
 0x573   :  { %2640 = vmatprep.subr.mxu0 %v3020_v0 }
 0x574   :  { %2641 = vmatpush3.msra.mxu0 %v1164_v20 }
 0x575   :  { %2642 = vmatprep.subr.mxu0 %v3020_v0 }
 0x576   :  { %2643 = vmatpush3.msra.mxu0 %v1163_v21 }
 0x577   :  { %2644 = vmatprep.subr.mxu0 %v3020_v0 }
 0x578   :  { %2645 = vmatpush3.msra.mxu0 %v1162_v22 }
 0x579   :  { %2646 = vmatprep.subr.mxu0 %v3020_v0 }
 0x57a   :  { %2647 = vmatpush3.msra.mxu0 %v1161_v23 }
 0x57b   :  { %2648 = vmatprep.subr.mxu0 %v3020_v0 }
 0x57c   :  { %2649 = vmatpush3.msra.mxu0 %v1160_v24 }
 0x57d   :  { %2650 = vmatprep.subr.mxu0 %v3020_v0 }
 0x57e   :  { %2651 = vmatpush3.msra.mxu0 %v1159_v25 }
 0x57f   :  { %2652 = vmatprep.subr.mxu0 %v3020_v0 }
 0x580   :  { %2653 = vmatpush3.msra.mxu0 %v1158_v26 }
 0x581   :  { %2654 = vmatprep.subr.mxu0 %v3020_v0 }
 0x582   :  { %2655 = vmatpush3.msra.mxu0 %v1157_v27 }
 0x583   :  { %2656 = vmatprep.subr.mxu0 %v3020_v0 }
 0x584   :  { %2657 = vmatpush3.msra.mxu0 %v1156_v28 }
 0x585   :  { %2658 = vmatprep.subr.mxu0 %v3020_v0 }
 0x586   :  { %2659 = vmatpush3.msra.mxu0 %v1155_v30 }
 0x587   :  { %2698 = vmatprep.subr.mxu0 %v3020_v0 }
 0x631   :  { %v1044_v32 = vpop.f32.mrf.mxu1 }
 0x632   :  { %v3323_v33 = vadd.f32 %v2187_v31, %v1044_v32 }
 0x633   :  { %v2627_v34 = vpop.f32.mrf.mxu1 }
 0x634   :  { %v1051_v37 = vand.u32 2139095040, %v3323_v33  ;;  %v1048_v44 = vand.u32 2147483647, %v3323_v33  ;;  %vm1050_vm15 = vcmp.lt.s32.totalorder %v3323_v33, 0  ;;  %vm1140_vm5 = vweird.f32 %v3323_v33 }
 0x636   :  { %v1052_v40 = vshrl.u32 %v1051_v37, 23  ;;  %v1055_v48 = vand.u32 8388607, %v1048_v44  ;;  %vm1049_vm1 = vcmp.le.f32.partialorder %v1048_v44, 0.7853982 }
 0x638   :  { %v2188_v41 = vadd.s32 4294967169, %v1052_v40  ;;  %v1056_v4 = vor.u32 8388608, %v1055_v48 }
 0x63a   :  { %v1058_v43 = vadd.s32 1, %v2188_v41  ;;  %v1096_v14 = vshll.u32 %v1056_v4, 8 }
 0x63c   :  { %vm1059_vm8 = vcmp.gt.s32.totalorder %v1058_v43, 0 }
 0x63d   :  { %v1060_v46 = vsel %vm1059_vm8, %v1058_v43, 0 }
 0x63e   :  { %v1062_v47 = vand.u32 31, %v1060_v46  ;;  %v1061_v53 = vshrl.u32 %v1060_v46, 5 }
 0x640   :  { %v1063_v52 = vsub.s32 32, %v1062_v47  ;;  %v1065_v54 = vshll.u32 %v3025_v57, %v1062_v47  ;;  %v1068_v56 = vshll.u32 %v3026_v59, %v1062_v47  ;;  %v1071_v61 = vshll.u32 %v3027_v62, %v1062_v47 }
 0x641   :  { %v1074_v1 = vshll.u32 %v3022_v49, %v1062_v47  ;;  %v1077_v3 = vshll.u32 %v3023_v51, %v1062_v47  ;;  %vm1080_vm9 = vcmp.lt.s32.totalorder %v1061_v53, 1  ;;  %vm1083_vm10 = vcmp.lt.s32.totalorder %v1061_v53, 4 }
 0x642   :  { %v1066_v58 = vshrl.u32 %v3026_v59, %v1063_v52  ;;  %v1069_v60 = vshrl.u32 %v3027_v62, %v1063_v52  ;;  %v1072_v63 = vshrl.u32 %v3022_v49, %v1063_v52  ;;  %v1075_v2 = vshrl.u32 %v3023_v51, %v1063_v52 }
 0x643   :  { %v1078_v35 = vshrl.u32 %v3024_v55, %v1063_v52  ;;  %v1064_v10 = vshrl.u32 %v3025_v57, %v1063_v52  ;;  %vm1082_vm11 = vcmp.lt.s32.totalorder %v1061_v53, 3  ;;  %vm1081_vm12 = vcmp.lt.s32.totalorder %v1061_v53, 2 }
 0x644   :  { %v1067_v5 = vor.u32 %v1066_v58, %v1065_v54  ;;  %v1070_v6 = vor.u32 %v1069_v60, %v1068_v56  ;;  %v1073_v7 = vor.u32 %v1072_v63, %v1071_v61  ;;  %v1076_v8 = vor.u32 %v1075_v2, %v1074_v1 }
 0x645   :  { %v1079_v39 = vor.u32 %v1078_v35, %v1077_v3 }
 0x646   :  { %v1085_v9 = vsel %vm1083_vm10, %v1073_v7, 2102212464  ;;  %v1088_v45 = vsel %vm1080_vm9, %v1067_v5, %v1070_v6  ;;  %v1092_v29 = vsel %vm1080_vm9, %v1070_v6, %v1073_v7  ;;  %v1089_v11 = vsel %vm1083_vm10, %v1076_v8, 920167782 }
 0x647   :  { %v1093_v12 = vsel %vm1083_vm10, %v1079_v39, 1326507024  ;;  %v1090_v50 = vsel %vm1082_vm11, %v1073_v7, %v1089_v11  ;;  %v1084_v15 = vsel %vm1080_vm9, %v1064_v10, %v1067_v5  ;;  %v1086_v36 = vsel %vm1082_vm11, %v1070_v6, %v1085_v9 }
 0x648   :  { %v1094_v13 = vsel %vm1082_vm11, %v1076_v8, %v1093_v12  ;;  %v1091_v16 = vsel %vm1081_vm12, %v1088_v45, %v1090_v50  ;;  %v1087_v21 = vsel %vm1081_vm12, %v1084_v15, %v1086_v36  ;;  %v1371_v50 = vld [vmem:[#allocation5 + $0x3f8] sm:$0xff]  ;;  %v1368_v15 = vld [vmem:[#allocation5 + $0x3e0] sm:$0xff]  ;;  %v1366_v36 = vld [vmem:[#allocation5 + $0x3d0] sm:$0xff] }
 0x649   :  { %v1095_v38 = vsel %vm1081_vm12, %v1092_v29, %v1094_v13  ;;  %v3343_v19 = vmul.u32.u64.low %v1096_v14, %v1091_v16  ;;  %v3344_v20 = vmul.u32.u64.high %v1096_v14, %v1091_v16, %v3343_v19  ;;  %v1103_v23 = vmul.u32 %v1096_v14, %v1087_v21  ;;  %2664 = vmatpush3.msra.mxu1 %v1371_v50  ;;  %v1370_v13 = vld [vmem:[#allocation5 + $0x3f0] sm:$0xff]  ;;  %v1365_v16 = vld [vmem:[#allocation5 + $0x3c8] sm:$0xff]  ;;  %v1359_v21 = vld [vmem:[#allocation5 + $0x398] sm:$0xff] }
 0x64a   :  { %v3340_v17 = vmul.u32.u64.low %v1096_v14, %v1095_v38  ;;  %v3341_v42 = vmul.u32.u64.high %v1096_v14, %v1095_v38, %v3340_v17  ;;  %2665 = vmatprep.subr.mxu1 %v3020_v0  ;;  %v1369_v14 = vld [vmem:[#allocation5 + $0x3e8] sm:$0xff]  ;;  %v1364_v38 = vld [vmem:[#allocation5 + $0x3c0] sm:$0xff] }
 0x64b   :  { %v1106_v22 = vadd.s32 1, %v3344_v20  ;;  %2666 = vmatpush3.msra.mxu1 %v1370_v13  ;;  %v1363_v17 = vld [vmem:[#allocation5 + $0x3b8] sm:$0xff] }
 0x64c   :  { %vm1105_vm13 = vc.u32 %v3341_v42, %v3343_v19  ;;  %v1104_v41 = vadd.s32 %v3343_v19, %v3341_v42  ;;  %2667 = vmatprep.subr.mxu1 %v3020_v0  ;;  %v1362_v42 = vld [vmem:[#allocation5 + $0x3b0] sm:$0xff]  ;;  %v1361_v19 = vld [vmem:[#allocation5 + $0x3a8] sm:$0xff] }
 0x64d   :  { %v1107_v24 = vsel %vm1105_vm13, %v1106_v22, %v3344_v20  ;;  %2668 = vmatpush3.msra.mxu1 %v1369_v14  ;;  %v1360_v20 = vld [vmem:[#allocation5 + $0x3a0] sm:$0xff]  ;;  %v1358_v22 = vld [vmem:[#allocation5 + $0x390] sm:$0xff] }
 0x64e   :  { %v1108_v25 = vadd.s32 %v1107_v24, %v1103_v23  ;;  %2669 = vmatprep.subr.mxu1 %v3020_v0  ;;  %v1357_v23 = vld [vmem:[#allocation5 + $0x388] sm:$0xff]  ;;  %v1356_v24 = vld [vmem:[#allocation5 + $0x380] sm:$0xff] }
 0x64f   :  { %2670 = vmatpush3.msra.mxu1 %v1368_v15 }
 0x650   :  { %v1109_v26 = vadd.s32 536870912, %v1108_v25  ;;  %2671 = vmatprep.subr.mxu1 %v3020_v0 }
 0x652   :  { %v1110_v27 = vshrl.u32 %v1109_v26, 30  ;;  %v1466_v26 = vld [vmem:[#allocation5 + $0x470] sm:$0xff] }
 0x654   :  { %v1111_v28 = vshll.u32 %v1110_v27, 30  ;;  %v1134_v1 = vsub.s32 4, %v1110_v27 }
 0x656   :  { %v1112_v30 = vsub.s32 %v1108_v25, %v1111_v28  ;;  %v1135_v35 = vsel %vm1050_vm15, %v1134_v1, %v1110_v27  ;;  %v1467_v25 = vld [vmem:[#allocation5 + $0x478] sm:$0xff]  ;;  %v1465_v27 = vld [vmem:[#allocation5 + $0x468] sm:$0xff]  ;;  %v1464_v28 = vld [vmem:[#allocation5 + $0x460] sm:$0xff] }
 0x657   :  { %v1137_v4 = vsel %vm1049_vm1, 0, %v1135_v35 }
 0x658   :  { %v1114_v31 = vsub.s32 0, %v1112_v30  ;;  %v1141_v5 = vadd.s32 3, %v1137_v4 }
 0x65a   :  { %v2189_v32 = vmin.u32 %v1114_v31, %v1112_v30  ;;  %v1142_v6 = vand.u32 3, %v1141_v5  ;;  %v1462_v31 = vld [vmem:[#allocation5 + $0x450] sm:$0xff] }
 0x65c   :  { %v1116_v34 = vclz %v2189_v32  ;;  %vm1147_vm2 = vcmp.eq.s32.totalorder %v1142_v6, 2  ;;  %vm1144_vm3 = vcmp.eq.s32.totalorder %v1142_v6, 0  ;;  %vm1143_vm4 = vcmp.lt.s32.totalorder %v1142_v6, 2  ;;  %v1461_v32 = vld [vmem:[#allocation5 + $0x448] sm:$0xff] }
 0x65e   :  { %v2190_v37 = vadd.s32 4294967294, %v1116_v34  ;;  %v1460_v34 = vld [vmem:[#allocation5 + $0x440] sm:$0xff] }
 0x660   :  { %vm2191_vm14 = vcmp.lt.s32.totalorder %v2190_v37, 0 }
 0x661   :  { %v1119_v40 = vsel %vm2191_vm14, 0, %v2190_v37  ;;  %v1459_v37 = vld [vmem:[#allocation5 + $0x438] sm:$0xff] }
 0x662   :  { %v1120_v43 = vsub.s32 32, %v1119_v40  ;;  %v1124_v46 = vsub.s32 4294967266, %v1119_v40  ;;  %v1121_v47 = vshll.u32 %v1112_v30, %v1119_v40  ;;  %v1463_v30 = vld [vmem:[#allocation5 + $0x458] sm:$0xff]  ;;  %v1458_v40 = vld [vmem:[#allocation5 + $0x430] sm:$0xff] }
 0x664   :  { %v1122_v48 = vshrl.u32 %v1104_v41, %v1120_v43  ;;  %v1125_v52 = vadd.s32 127, %v1124_v46  ;;  %v1457_v41 = vld [vmem:[#allocation5 + $0x428] sm:$0xff]  ;;  %v1456_v43 = vld [vmem:[#allocation5 + $0x420] sm:$0xff]  ;;  %v1455_v46 = vld [vmem:[#allocation5 + $0x418] sm:$0xff] }
 0x666   :  { %v1123_v53 = vor.u32 %v1122_v48, %v1121_v47  ;;  %v1126_v54 = vshll.u32 %v1125_v52, 23  ;;  %v2192_v47 = vld [vmem:[#allocation7 + $0x6] ss:$0 sm:$0xff] }
 0x668   :  { %v1127_v56 = vor.u32 4788187, %v1126_v54  ;;  %v1130_v60 = vcvt.s32.f32 %v1123_v53 }
 0x66a   :  { %v1128_v58 = vand.u32 2147483647, %v1127_v56 }
 0x66c   :  { %v1131_v61 = vmul.f32 %v1130_v60, %v1128_v58 }
 0x66e   :  { %v1132_v63 = vxor.u32 2147483648, %v1131_v61 }
 0x670   :  { %v1133_v2 = vsel %vm1050_vm15, %v1132_v63, %v1131_v61 }
 0x671   :  { %v1136_v3 = vsel %vm1049_vm1, %v3323_v33, %v1133_v2 }
 0x672   :  { %2906 = vcosq.f32 %v1136_v3 }
 0x673   :  { %2908 = vsinq.f32 %v1136_v3 }
 0x67f   :  { %v2907_v7 = vpop.eup %2906 }
 0x680   :  { %v2909_v8 = vpop.eup %2908  ;;  %v1148_v39 = vxor.u32 2147483648, %v2907_v7 }
 0x681   :  { %v1145_v9 = vxor.u32 2147483648, %v2909_v8 }
 0x682   :  { %v1149_v45 = vsel %vm1147_vm2, %v1148_v39, %v2909_v8 }
 0x683   :  { %v1146_v29 = vsel %vm1144_vm3, %v2907_v7, %v1145_v9 }
 0x684   :  { %v1150_v44 = vsel %vm1143_vm4, %v1146_v29, %v1149_v45 }
 0x685   :  { %v1151_v10 = vsel %vm1140_vm5, nan, %v1150_v44 }
 0x686   :  { %v1152_v11 = vmul.f32 %v1151_v10, %v1151_v10 }
 0x688   :  { %v1153_v12 = vadd.f32 %v1152_v11, %v3323_v33  ;;  %v1367_v33 = vld [vmem:[#allocation5 + $0x3d8] sm:$0xff] }
 0x689   :  { %2672 = vmatpush3.msra.mxu1 %v1367_v33 }
 0x68a   :  { %2661 = vmatmul.mubr.f32.vlgmr.msra.gmra.mxu0 %v1153_v12  ;;  %2673 = vmatprep.subr.mxu1 %v3020_v0 }
 0x68b   :  { %2730 = vmatprep.mubr.msk.f32.mxu0 %vm3021_vm0, %v3020_v0  ;;  %2674 = vmatpush3.msra.mxu1 %v1366_v36 }
 0x68c   :  { %2675 = vmatprep.subr.mxu1 %v3020_v0  ;;  %2699 = vmatpush3.msra.mxu0 %v1467_v25 }
 0x68d   :  { %2676 = vmatpush3.msra.mxu1 %v1365_v16  ;;  %2700 = vmatprep.subr.mxu0 %v3020_v0 }
 0x68e   :  { %2677 = vmatprep.subr.mxu1 %v3020_v0  ;;  %2701 = vmatpush3.msra.mxu0 %v1466_v26 }
 0x68f   :  { %2678 = vmatpush3.msra.mxu1 %v1364_v38  ;;  %2702 = vmatprep.subr.mxu0 %v3020_v0 }
 0x690   :  { %2679 = vmatprep.subr.mxu1 %v3020_v0  ;;  %2703 = vmatpush3.msra.mxu0 %v1465_v27 }
 0x691   :  { %2680 = vmatpush3.msra.mxu1 %v1363_v17  ;;  %2704 = vmatprep.subr.mxu0 %v3020_v0 }
 0x692   :  { %2681 = vmatprep.subr.mxu1 %v3020_v0  ;;  %2705 = vmatpush3.msra.mxu0 %v1464_v28 }
 0x693   :  { %2682 = vmatpush3.msra.mxu1 %v1362_v42  ;;  %2706 = vmatprep.subr.mxu0 %v3020_v0 }
 0x694   :  { %2683 = vmatprep.subr.mxu1 %v3020_v0  ;;  %2707 = vmatpush3.msra.mxu0 %v1463_v30 }
 0x695   :  { %2684 = vmatpush3.msra.mxu1 %v1361_v19  ;;  %2708 = vmatprep.subr.mxu0 %v3020_v0 }
 0x696   :  { %2685 = vmatprep.subr.mxu1 %v3020_v0  ;;  %2709 = vmatpush3.msra.mxu0 %v1462_v31 }
 0x697   :  { %2686 = vmatpush3.msra.mxu1 %v1360_v20  ;;  %2710 = vmatprep.subr.mxu0 %v3020_v0 }
 0x698   :  { %2687 = vmatprep.subr.mxu1 %v3020_v0  ;;  %2711 = vmatpush3.msra.mxu0 %v1461_v32 }
 0x699   :  { %2688 = vmatpush3.msra.mxu1 %v1359_v21  ;;  %2712 = vmatprep.subr.mxu0 %v3020_v0 }
 0x69a   :  { %2689 = vmatprep.subr.mxu1 %v3020_v0  ;;  %2713 = vmatpush3.msra.mxu0 %v1460_v34 }
 0x69b   :  { %2690 = vmatpush3.msra.mxu1 %v1358_v22  ;;  %2714 = vmatprep.subr.mxu0 %v3020_v0 }
 0x69c   :  { %2691 = vmatprep.subr.mxu1 %v3020_v0  ;;  %2715 = vmatpush3.msra.mxu0 %v1459_v37 }
 0x69d   :  { %2692 = vmatpush3.msra.mxu1 %v1357_v23  ;;  %2716 = vmatprep.subr.mxu0 %v3020_v0 }
 0x69e   :  { %2693 = vmatprep.subr.mxu1 %v3020_v0  ;;  %2717 = vmatpush3.msra.mxu0 %v1458_v40 }
 0x69f   :  { %2694 = vmatpush3.msra.mxu1 %v1356_v24  ;;  %2718 = vmatprep.subr.mxu0 %v3020_v0 }
 0x6a0   :  { %2733 = vmatprep.subr.mxu1 %v3020_v0  ;;  %2719 = vmatpush3.msra.mxu0 %v1457_v41 }
 0x6a1   :  { %2720 = vmatprep.subr.mxu0 %v3020_v0 }
 0x6a2   :  { %2721 = vmatpush3.msra.mxu0 %v1456_v43 }
 0x6a3   :  { %2722 = vmatprep.subr.mxu0 %v3020_v0 }
 0x6a4   :  { %2723 = vmatpush3.msra.mxu0 %v1455_v46 }
 0x6a5   :  { %2724 = vmatprep.subr.mxu0 %v3020_v0 }
 0x74a   :  { %v1245_v48 = vpop.f32.mrf.mxu0 }
 0x74b   :  { %v3387_v52 = vadd.f32 %v2192_v47, %v1245_v48 }
 0x74c   :  { %v2662_v53 = vpop.f32.mrf.mxu0 }
 0x74d   :  { %v1252_v54 = vand.u32 2139095040, %v3387_v52  ;;  %v1249_v61 = vand.u32 2147483647, %v3387_v52  ;;  %vm1251_vm13 = vcmp.lt.s32.totalorder %v3387_v52, 0  ;;  %vm1341_vm3 = vweird.f32 %v3387_v52 }
 0x74f   :  { %v1253_v56 = vshrl.u32 %v1252_v54, 23  ;;  %v1256_v2 = vand.u32 8388607, %v1249_v61  ;;  %vm1250_vm14 = vcmp.le.f32.partialorder %v1249_v61, 0.7853982 }
 0x751   :  { %v2193_v58 = vadd.s32 4294967169, %v1253_v56  ;;  %v1257_v10 = vor.u32 8388608, %v1256_v2 }
 0x753   :  { %v1259_v60 = vadd.s32 1, %v2193_v58  ;;  %v1297_v20 = vshll.u32 %v1257_v10, 8 }
 0x755   :  { %vm1260_vm6 = vcmp.gt.s32.totalorder %v1259_v60, 0 }
 0x756   :  { %v1261_v63 = vsel %vm1260_vm6, %v1259_v60, 0 }
 0x757   :  { %v1263_v1 = vand.u32 31, %v1261_v63  ;;  %v1262_v35 = vshrl.u32 %v1261_v63, 5 }
 0x759   :  { %v1264_v3 = vsub.s32 32, %v1263_v1  ;;  %v1266_v4 = vshll.u32 %v3025_v57, %v1263_v1  ;;  %v1269_v5 = vshll.u32 %v3026_v59, %v1263_v1  ;;  %v1272_v8 = vshll.u32 %v3027_v62, %v1263_v1 }
 0x75a   :  { %v1275_v9 = vshll.u32 %v3022_v49, %v1263_v1  ;;  %v1278_v29 = vshll.u32 %v3023_v51, %v1263_v1  ;;  %vm1281_vm7 = vcmp.lt.s32.totalorder %v1262_v35, 1  ;;  %vm1284_vm8 = vcmp.lt.s32.totalorder %v1262_v35, 4 }
 0x75b   :  { %v1267_v6 = vshrl.u32 %v3026_v59, %v1264_v3  ;;  %v1270_v7 = vshrl.u32 %v3027_v62, %v1264_v3  ;;  %v1273_v39 = vshrl.u32 %v3022_v49, %v1264_v3  ;;  %v1276_v45 = vshrl.u32 %v3023_v51, %v1264_v3 }
 0x75c   :  { %v1279_v44 = vshrl.u32 %v3024_v55, %v1264_v3  ;;  %v1265_v16 = vshrl.u32 %v3025_v57, %v1264_v3  ;;  %vm1283_vm9 = vcmp.lt.s32.totalorder %v1262_v35, 3  ;;  %vm1282_vm10 = vcmp.lt.s32.totalorder %v1262_v35, 2 }
 0x75d   :  { %v1268_v11 = vor.u32 %v1267_v6, %v1266_v4  ;;  %v1271_v12 = vor.u32 %v1270_v7, %v1269_v5  ;;  %v1274_v50 = vor.u32 %v1273_v39, %v1272_v8  ;;  %v1277_v13 = vor.u32 %v1276_v45, %v1275_v9 }
 0x75e   :  { %v1280_v14 = vor.u32 %v1279_v44, %v1278_v29 }
 0x75f   :  { %v1286_v15 = vsel %vm1284_vm8, %v1274_v50, 2102212464  ;;  %v1289_v33 = vsel %vm1281_vm7, %v1268_v11, %v1271_v12  ;;  %v1293_v36 = vsel %vm1281_vm7, %v1271_v12, %v1274_v50  ;;  %v1290_v38 = vsel %vm1284_vm8, %v1277_v13, 920167782 }
 0x760   :  { %v1294_v17 = vsel %vm1284_vm8, %v1280_v14, 1326507024  ;;  %v1291_v42 = vsel %vm1283_vm9, %v1274_v50, %v1290_v38  ;;  %v1285_v21 = vsel %vm1281_vm7, %v1265_v16, %v1268_v11  ;;  %v1287_v22 = vsel %vm1283_vm9, %v1271_v12, %v1286_v15 }
 0x761   :  { %v1295_v19 = vsel %vm1283_vm9, %v1277_v13, %v1294_v17  ;;  %v1292_v23 = vsel %vm1282_vm10, %v1289_v33, %v1291_v42  ;;  %v1288_v30 = vsel %vm1282_vm10, %v1285_v21, %v1287_v22  ;;  %v1454_v42 = vld [vmem:[#allocation5 + $0x410] sm:$0xff]  ;;  %v2197_v21 = vld [vmem:[#allocation7 + $0x7] ss:$0 sm:$0xff] }
 0x762   :  { %v1296_v24 = vsel %vm1282_vm10, %v1293_v36, %v1295_v19  ;;  %v3407_v27 = vmul.u32.u64.low %v1297_v20, %v1292_v23  ;;  %v3408_v28 = vmul.u32.u64.high %v1297_v20, %v1292_v23, %v3407_v27  ;;  %v1304_v32 = vmul.u32 %v1297_v20, %v1288_v30  ;;  %2725 = vmatpush3.msra.mxu0 %v1454_v42  ;;  %v1453_v19 = vld [vmem:[#allocation5 + $0x408] sm:$0xff]  ;;  %v1663_v30 = vld [vmem:[#allocation5 + $0x4d0] sm:$0xff] }
 0x763   :  { %v3404_v25 = vmul.u32.u64.low %v1297_v20, %v1296_v24  ;;  %v3405_v26 = vmul.u32.u64.high %v1297_v20, %v1296_v24, %v3404_v25  ;;  %2726 = vmatprep.subr.mxu0 %v3020_v0  ;;  %v1452_v20 = vld [vmem:[#allocation5 + $0x400] sm:$0xff] }
 0x764   :  { %v1307_v31 = vadd.s32 1, %v3408_v28  ;;  %2727 = vmatpush3.msra.mxu0 %v1453_v19  ;;  %v1668_v25 = vld [vmem:[#allocation5 + $0x4f8] sm:$0xff] }
 0x765   :  { %vm1306_vm11 = vc.u32 %v3405_v26, %v3407_v27  ;;  %v1305_v58 = vadd.s32 %v3407_v27, %v3405_v26  ;;  %2728 = vmatprep.subr.mxu0 %v3020_v0  ;;  %v1667_v26 = vld [vmem:[#allocation5 + $0x4f0] sm:$0xff]  ;;  %v1666_v27 = vld [vmem:[#allocation5 + $0x4e8] sm:$0xff] }
 0x766   :  { %v1308_v34 = vsel %vm1306_vm11, %v1307_v31, %v3408_v28  ;;  %2729 = vmatpush3.msra.mxu0 %v1452_v20  ;;  %v1665_v28 = vld [vmem:[#allocation5 + $0x4e0] sm:$0xff]  ;;  %v1662_v31 = vld [vmem:[#allocation5 + $0x4c8] sm:$0xff] }
 0x767   :  { %v1309_v37 = vadd.s32 %v1308_v34, %v1304_v32  ;;  %2768 = vmatprep.subr.mxu0 %v3020_v0  ;;  %v1661_v32 = vld [vmem:[#allocation5 + $0x4c0] sm:$0xff]  ;;  %v1660_v34 = vld [vmem:[#allocation5 + $0x4b8] sm:$0xff] }
 0x769   :  { %v1310_v40 = vadd.s32 536870912, %v1309_v37 }
 0x76b   :  { %v1311_v41 = vshrl.u32 %v1310_v40, 30  ;;  %v1658_v40 = vld [vmem:[#allocation5 + $0x4a8] sm:$0xff] }
 0x76d   :  { %v1312_v43 = vshll.u32 %v1311_v41, 30  ;;  %v1335_v9 = vsub.s32 4, %v1311_v41 }
 0x76f   :  { %v1313_v46 = vsub.s32 %v1309_v37, %v1312_v43  ;;  %v1336_v44 = vsel %vm1251_vm13, %v1335_v9, %v1311_v41  ;;  %v1659_v37 = vld [vmem:[#allocation5 + $0x4b0] sm:$0xff]  ;;  %v1657_v41 = vld [vmem:[#allocation5 + $0x4a0] sm:$0xff]  ;;  %v1656_v43 = vld [vmem:[#allocation5 + $0x498] sm:$0xff] }
 0x770   :  { %v1338_v10 = vsel %vm1250_vm14, 0, %v1336_v44 }
 0x771   :  { %v1315_v47 = vsub.s32 0, %v1313_v46  ;;  %v1342_v11 = vadd.s32 3, %v1338_v10 }
 0x773   :  { %v2194_v48 = vmin.u32 %v1315_v47, %v1313_v46  ;;  %v1343_v12 = vand.u32 3, %v1342_v11  ;;  %v1654_v47 = vld [vmem:[#allocation5 + $0x488] sm:$0xff] }
 0x775   :  { %v1317_v53 = vclz %v2194_v48  ;;  %vm1348_vm15 = vcmp.eq.s32.totalorder %v1343_v12, 2  ;;  %vm1345_vm1 = vcmp.eq.s32.totalorder %v1343_v12, 0  ;;  %vm1344_vm2 = vcmp.lt.s32.totalorder %v1343_v12, 2  ;;  %v1653_v48 = vld [vmem:[#allocation5 + $0x480] sm:$0xff] }
 0x777   :  { %v2195_v54 = vadd.s32 4294967294, %v1317_v53  ;;  %v2198_v53 = vld [vmem:[#allocation7 + $0x8] ss:$0 sm:$0xff] }
 0x779   :  { %vm2196_vm12 = vcmp.lt.s32.totalorder %v2195_v54, 0 }
 0x77a   :  { %v1320_v56 = vsel %vm2196_vm12, 0, %v2195_v54 }
 0x77b   :  { %v1321_v60 = vsub.s32 32, %v1320_v56  ;;  %v1325_v63 = vsub.s32 4294967266, %v1320_v56  ;;  %v1322_v1 = vshll.u32 %v1313_v46, %v1320_v56  ;;  %v1655_v46 = vld [vmem:[#allocation5 + $0x490] sm:$0xff] }
 0x77d   :  { %v1323_v2 = vshrl.u32 %v1305_v58, %v1321_v60  ;;  %v1326_v3 = vadd.s32 127, %v1325_v63 }
 0x77f   :  { %v1324_v35 = vor.u32 %v1323_v2, %v1322_v1  ;;  %v1327_v4 = vshll.u32 %v1326_v3, 23 }
 0x781   :  { %v1328_v5 = vor.u32 4788187, %v1327_v4  ;;  %v1331_v7 = vcvt.s32.f32 %v1324_v35 }
 0x783   :  { %v1329_v6 = vand.u32 2147483647, %v1328_v5 }
 0x785   :  { %v1332_v8 = vmul.f32 %v1331_v7, %v1329_v6 }
 0x787   :  { %v1333_v39 = vxor.u32 2147483648, %v1332_v8 }
 0x789   :  { %v1334_v45 = vsel %vm1251_vm13, %v1333_v39, %v1332_v8 }
 0x78a   :  { %v1337_v29 = vsel %vm1250_vm14, %v3387_v52, %v1334_v45 }
 0x78b   :  { %2910 = vcosq.f32 %v1337_v29 }
 0x78c   :  { %2912 = vsinq.f32 %v1337_v29 }
 0x798   :  { %v2911_v50 = vpop.eup %2910 }
 0x799   :  { %v2913_v13 = vpop.eup %2912  ;;  %v1349_v14 = vxor.u32 2147483648, %v2911_v50 }
 0x79a   :  { %v1346_v15 = vxor.u32 2147483648, %v2913_v13 }
 0x79b   :  { %v1350_v33 = vsel %vm1348_vm15, %v1349_v14, %v2913_v13 }
 0x79c   :  { %v1347_v36 = vsel %vm1345_vm1, %v2911_v50, %v1346_v15 }
 0x79d   :  { %v1351_v61 = vsel %vm1344_vm2, %v1347_v36, %v1350_v33 }
 0x79e   :  { %v1352_v16 = vsel %vm1341_vm3, nan, %v1351_v61 }
 0x79f   :  { %v1353_v38 = vmul.f32 %v1352_v16, %v1352_v16 }
 0x7a1   :  { %v1354_v17 = vadd.f32 %v1353_v38, %v3387_v52 }
 0x7a3   :  { %2696 = vmatmul.mubr.f32.vlgmr.msra.gmra.mxu1 %v1354_v17 }
 0x7a4   :  { %2765 = vmatprep.mubr.msk.f32.mxu1 %vm3021_vm0, %v3020_v0  ;;  %2734 = vmatpush3.msra.mxu1 %v1668_v25 }
 0x7a5   :  { %2735 = vmatprep.subr.mxu1 %v3020_v0 }
 0x7a6   :  { %2736 = vmatpush3.msra.mxu1 %v1667_v26 }
 0x7a7   :  { %2737 = vmatprep.subr.mxu1 %v3020_v0 }
 0x7a8   :  { %2738 = vmatpush3.msra.mxu1 %v1666_v27 }
 0x7a9   :  { %2739 = vmatprep.subr.mxu1 %v3020_v0 }
 0x7aa   :  { %2740 = vmatpush3.msra.mxu1 %v1665_v28 }
 0x7ab   :  { %2741 = vmatprep.subr.mxu1 %v3020_v0 }
 0x863   :  { %v1446_v22 = vpop.f32.mrf.mxu1 }
 0x864   :  { %v1447_v23 = vadd.f32 %v2197_v21, %v1446_v22 }
 0x865   :  { %v2697_v52 = vpop.f32.mrf.mxu1 }
 0x866   :  { %v1450_v24 = vadd.f32 %v1447_v23, %v3251_v18  ;;  %v1664_v18 = vld [vmem:[#allocation5 + $0x4d8] sm:$0xff] }
 0x867   :  { %2742 = vmatpush3.msra.mxu1 %v1664_v18 }
 0x868   :  { %2731 = vmatmul.mubr.f32.vlgmr.msra.gmra.mxu0 %v1450_v24  ;;  %2743 = vmatprep.subr.mxu1 %v3020_v0 }
 0x869   :  { %2800 = vmatprep.mubr.msk.f32.mxu0 %vm3021_vm0, %v3020_v0  ;;  %2744 = vmatpush3.msra.mxu1 %v1663_v30 }
 0x86a   :  { %2745 = vmatprep.subr.mxu1 %v3020_v0 }
 0x86b   :  { %2746 = vmatpush3.msra.mxu1 %v1662_v31 }
 0x86c   :  { %2747 = vmatprep.subr.mxu1 %v3020_v0 }
 0x86d   :  { %2748 = vmatpush3.msra.mxu1 %v1661_v32 }
 0x86e   :  { %2749 = vmatprep.subr.mxu1 %v3020_v0 }
 0x86f   :  { %2750 = vmatpush3.msra.mxu1 %v1660_v34 }
 0x870   :  { %2751 = vmatprep.subr.mxu1 %v3020_v0 }
 0x871   :  { %2752 = vmatpush3.msra.mxu1 %v1659_v37 }
 0x872   :  { %2753 = vmatprep.subr.mxu1 %v3020_v0 }
 0x873   :  { %2754 = vmatpush3.msra.mxu1 %v1658_v40 }
 0x874   :  { %2755 = vmatprep.subr.mxu1 %v3020_v0 }
 0x875   :  { %2756 = vmatpush3.msra.mxu1 %v1657_v41 }
 0x876   :  { %2757 = vmatprep.subr.mxu1 %v3020_v0 }
 0x877   :  { %2758 = vmatpush3.msra.mxu1 %v1656_v43 }
 0x878   :  { %2759 = vmatprep.subr.mxu1 %v3020_v0 }
 0x879   :  { %2760 = vmatpush3.msra.mxu1 %v1655_v46 }
 0x87a   :  { %2761 = vmatprep.subr.mxu1 %v3020_v0 }
 0x87b   :  { %2762 = vmatpush3.msra.mxu1 %v1654_v47 }
 0x87c   :  { %2763 = vmatprep.subr.mxu1 %v3020_v0 }
 0x87d   :  { %2764 = vmatpush3.msra.mxu1 %v1653_v48 }
 0x87e   :  { %2803 = vmatprep.subr.mxu1 %v3020_v0 }
 0x928   :  { %v1542_v54 = vpop.f32.mrf.mxu0 }
 0x929   :  { %v3444_v56 = vadd.f32 %v2198_v53, %v1542_v54 }
 0x92a   :  { %v2732_v58 = vpop.f32.mrf.mxu0 }
 0x92b   :  { %v1549_v60 = vand.u32 2139095040, %v3444_v56  ;;  %v1546_v3 = vand.u32 2147483647, %v3444_v56  ;;  %vm1548_vm11 = vcmp.lt.s32.totalorder %v3444_v56, 0  ;;  %vm1638_vm1 = vweird.f32 %v3444_v56 }
 0x92d   :  { %v1550_v63 = vshrl.u32 %v1549_v60, 23  ;;  %v1553_v5 = vand.u32 8388607, %v1546_v3  ;;  %vm1547_vm12 = vcmp.le.f32.partialorder %v1546_v3, 0.7853982 }
 0x92f   :  { %v2199_v1 = vadd.s32 4294967169, %v1550_v63  ;;  %v1554_v13 = vor.u32 8388608, %v1553_v5 }
 0x931   :  { %v1556_v2 = vadd.s32 1, %v2199_v1  ;;  %v1594_v23 = vshll.u32 %v1554_v13, 8 }
 0x933   :  { %vm1557_vm4 = vcmp.gt.s32.totalorder %v1556_v2, 0 }
 0x934   :  { %v1558_v35 = vsel %vm1557_vm4, %v1556_v2, 0 }
 0x935   :  { %v1560_v4 = vand.u32 31, %v1558_v35  ;;  %v1559_v7 = vshrl.u32 %v1558_v35, 5 }
 0x937   :  { %v1561_v6 = vsub.s32 32, %v1560_v4  ;;  %v1563_v8 = vshll.u32 %v3025_v57, %v1560_v4  ;;  %v1566_v39 = vshll.u32 %v3026_v59, %v1560_v4  ;;  %v1569_v29 = vshll.u32 %v3027_v62, %v1560_v4 }
 0x938   :  { %v1572_v10 = vshll.u32 %v3022_v49, %v1560_v4  ;;  %v1575_v12 = vshll.u32 %v3023_v51, %v1560_v4  ;;  %vm1578_vm5 = vcmp.lt.s32.totalorder %v1559_v7, 1  ;;  %vm1581_vm6 = vcmp.lt.s32.totalorder %v1559_v7, 4 }
 0x939   :  { %v1564_v9 = vshrl.u32 %v3026_v59, %v1561_v6  ;;  %v1567_v45 = vshrl.u32 %v3027_v62, %v1561_v6  ;;  %v1570_v44 = vshrl.u32 %v3022_v49, %v1561_v6  ;;  %v1573_v11 = vshrl.u32 %v3023_v51, %v1561_v6 }
 0x93a   :  { %v1576_v50 = vshrl.u32 %v3024_v55, %v1561_v6  ;;  %v1562_v42 = vshrl.u32 %v3025_v57, %v1561_v6  ;;  %vm1580_vm7 = vcmp.lt.s32.totalorder %v1559_v7, 3  ;;  %vm1579_vm8 = vcmp.lt.s32.totalorder %v1559_v7, 2 }
 0x93b   :  { %v1565_v14 = vor.u32 %v1564_v9, %v1563_v8  ;;  %v1568_v15 = vor.u32 %v1567_v45, %v1566_v39  ;;  %v1571_v33 = vor.u32 %v1570_v44, %v1569_v29  ;;  %v1574_v36 = vor.u32 %v1573_v11, %v1572_v10 }
 0x93c   :  { %v1577_v61 = vor.u32 %v1576_v50, %v1575_v12 }
 0x93d   :  { %v1583_v16 = vsel %vm1581_vm6, %v1571_v33, 2102212464  ;;  %v1586_v38 = vsel %vm1578_vm5, %v1565_v14, %v1568_v15  ;;  %v1590_v17 = vsel %vm1578_vm5, %v1568_v15, %v1571_v33  ;;  %v1587_v19 = vsel %vm1581_vm6, %v1574_v36, 920167782 }
 0x93e   :  { %v1591_v20 = vsel %vm1581_vm6, %v1577_v61, 1326507024  ;;  %v1588_v21 = vsel %vm1580_vm7, %v1571_v33, %v1587_v19  ;;  %v1582_v52 = vsel %vm1578_vm5, %v1562_v42, %v1565_v14  ;;  %v1584_v24 = vsel %vm1580_vm7, %v1568_v15, %v1583_v16 }
 0x93f   :  { %v1592_v22 = vsel %vm1580_vm7, %v1574_v36, %v1591_v20  ;;  %v1589_v25 = vsel %vm1579_vm8, %v1586_v38, %v1588_v21  ;;  %v1585_v31 = vsel %vm1579_vm8, %v1582_v52, %v1584_v24  ;;  %v1869_v20 = vld [vmem:[#allocation5 + $0x578] sm:$0xff]  ;;  %v1868_v21 = vld [vmem:[#allocation5 + $0x570] sm:$0xff]  ;;  %v1863_v24 = vld [vmem:[#allocation5 + $0x548] sm:$0xff] }
 0x940   :  { %v1593_v26 = vsel %vm1579_vm8, %v1590_v17, %v1592_v22  ;;  %v3464_v18 = vmul.u32.u64.low %v1594_v23, %v1589_v25  ;;  %v3465_v30 = vmul.u32.u64.high %v1594_v23, %v1589_v25, %v3464_v18  ;;  %v1601_v34 = vmul.u32 %v1594_v23, %v1585_v31  ;;  %2769 = vmatpush3.msra.mxu0 %v1869_v20  ;;  %v1867_v22 = vld [vmem:[#allocation5 + $0x568] sm:$0xff]  ;;  %v1864_v52 = vld [vmem:[#allocation5 + $0x550] sm:$0xff]  ;;  %v1862_v25 = vld [vmem:[#allocation5 + $0x540] sm:$0xff] }
 0x941   :  { %v3461_v27 = vmul.u32.u64.low %v1594_v23, %v1593_v26  ;;  %v3462_v28 = vmul.u32.u64.high %v1594_v23, %v1593_v26, %v3461_v27  ;;  %2770 = vmatprep.subr.mxu0 %v3020_v0  ;;  %v1866_v23 = vld [vmem:[#allocation5 + $0x560] sm:$0xff]  ;;  %v1861_v26 = vld [vmem:[#allocation5 + $0x538] sm:$0xff]  ;;  %v1856_v31 = vld [vmem:[#allocation5 + $0x510] sm:$0xff] }
 0x942   :  { %v1604_v32 = vadd.s32 1, %v3465_v30  ;;  %2771 = vmatpush3.msra.mxu0 %v1868_v21  ;;  %v1860_v27 = vld [vmem:[#allocation5 + $0x530] sm:$0xff] }
 0x943   :  { %vm1603_vm9 = vc.u32 %v3462_v28, %v3464_v18  ;;  %v1602_v63 = vadd.s32 %v3464_v18, %v3462_v28  ;;  %2772 = vmatprep.subr.mxu0 %v3020_v0  ;;  %v1859_v28 = vld [vmem:[#allocation5 + $0x528] sm:$0xff]  ;;  %v1858_v18 = vld [vmem:[#allocation5 + $0x520] sm:$0xff] }
 0x944   :  { %v1605_v37 = vsel %vm1603_vm9, %v1604_v32, %v3465_v30  ;;  %2773 = vmatpush3.msra.mxu0 %v1867_v22  ;;  %v1857_v30 = vld [vmem:[#allocation5 + $0x518] sm:$0xff]  ;;  %v1855_v32 = vld [vmem:[#allocation5 + $0x508] sm:$0xff] }
 0x945   :  { %v1606_v40 = vadd.s32 %v1605_v37, %v1601_v34  ;;  %2774 = vmatprep.subr.mxu0 %v3020_v0  ;;  %v1854_v34 = vld [vmem:[#allocation5 + $0x500] sm:$0xff]  ;;  %v2203_v37 = vld [vmem:[#allocation7 + $0x9] ss:$0 sm:$0xff] }
 0x946   :  { %2775 = vmatpush3.msra.mxu0 %v1866_v23 }
 0x947   :  { %v1607_v41 = vadd.s32 536870912, %v1606_v40  ;;  %2776 = vmatprep.subr.mxu0 %v3020_v0 }
 0x949   :  { %v1608_v43 = vshrl.u32 %v1607_v41, 30 }
 0x94b   :  { %v1609_v46 = vshll.u32 %v1608_v43, 30  ;;  %v1632_v44 = vsub.s32 4, %v1608_v43 }
 0x94d   :  { %v1610_v47 = vsub.s32 %v1606_v40, %v1609_v46  ;;  %v1633_v12 = vsel %vm1548_vm11, %v1632_v44, %v1608_v43 }
 0x94e   :  { %v1635_v50 = vsel %vm1547_vm12, 0, %v1633_v12 }
 0x94f   :  { %v1612_v48 = vsub.s32 0, %v1610_v47  ;;  %v1639_v13 = vadd.s32 3, %v1635_v50 }
 0x951   :  { %v2200_v53 = vmin.u32 %v1612_v48, %v1610_v47  ;;  %v1640_v14 = vand.u32 3, %v1639_v13 }
 0x953   :  { %v1614_v54 = vclz %v2200_v53  ;;  %vm1645_vm13 = vcmp.eq.s32.totalorder %v1640_v14, 2  ;;  %vm1642_vm14 = vcmp.eq.s32.totalorder %v1640_v14, 0  ;;  %vm1641_vm15 = vcmp.lt.s32.totalorder %v1640_v14, 2 }
 0x955   :  { %v2201_v58 = vadd.s32 4294967294, %v1614_v54 }
 0x957   :  { %vm2202_vm10 = vcmp.lt.s32.totalorder %v2201_v58, 0 }
 0x958   :  { %v1617_v60 = vsel %vm2202_vm10, 0, %v2201_v58 }
 0x959   :  { %v1618_v1 = vsub.s32 32, %v1617_v60  ;;  %v1622_v2 = vsub.s32 4294967266, %v1617_v60  ;;  %v1619_v35 = vshll.u32 %v1610_v47, %v1617_v60 }
 0x95b   :  { %v1620_v4 = vshrl.u32 %v1602_v63, %v1618_v1  ;;  %v1623_v5 = vadd.s32 127, %v1622_v2 }
 0x95d   :  { %v1621_v6 = vor.u32 %v1620_v4, %v1619_v35  ;;  %v1624_v7 = vshll.u32 %v1623_v5, 23 }
 0x95f   :  { %v1625_v8 = vor.u32 4788187, %v1624_v7  ;;  %v1628_v9 = vcvt.s32.f32 %v1621_v6 }
 0x961   :  { %v1626_v39 = vand.u32 2147483647, %v1625_v8 }
 0x963   :  { %v1629_v45 = vmul.f32 %v1628_v9, %v1626_v39 }
 0x965   :  { %v1630_v29 = vxor.u32 2147483648, %v1629_v45 }
 0x967   :  { %v1631_v10 = vsel %vm1548_vm11, %v1630_v29, %v1629_v45 }
 0x968   :  { %v1634_v11 = vsel %vm1547_vm12, %v3444_v56, %v1631_v10 }
 0x969   :  { %2914 = vcosq.f32 %v1634_v11 }
 0x96a   :  { %2916 = vsinq.f32 %v1634_v11 }
 0x976   :  { %v2915_v15 = vpop.eup %2914 }
 0x977   :  { %v2917_v33 = vpop.eup %2916  ;;  %v1646_v36 = vxor.u32 2147483648, %v2915_v15 }
 0x978   :  { %v1643_v61 = vxor.u32 2147483648, %v2917_v33 }
 0x979   :  { %v1647_v16 = vsel %vm1645_vm13, %v1646_v36, %v2917_v33 }
 0x97a   :  { %v1644_v38 = vsel %vm1642_vm14, %v2915_v15, %v1643_v61 }
 0x97b   :  { %v1648_v3 = vsel %vm1641_vm15, %v1644_v38, %v1647_v16 }
 0x97c   :  { %v1649_v17 = vsel %vm1638_vm1, nan, %v1648_v3 }
 0x97d   :  { %v1650_v42 = vmul.f32 %v1649_v17, %v1649_v17 }
 0x97f   :  { %v1651_v19 = vadd.f32 %v1650_v42, %v3444_v56  ;;  %v1865_v56 = vld [vmem:[#allocation5 + $0x558] sm:$0xff] }
 0x980   :  { %2777 = vmatpush3.msra.mxu0 %v1865_v56 }
 0x981   :  { %2766 = vmatmul.mubr.f32.vlgmr.msra.gmra.mxu1 %v1651_v19  ;;  %2778 = vmatprep.subr.mxu0 %v3020_v0 }
 0x982   :  { %2835 = vmatprep.mubr.msk.f32.mxu1 %vm3021_vm0, %v3020_v0  ;;  %2779 = vmatpush3.msra.mxu0 %v1864_v52 }
 0x983   :  { %2780 = vmatprep.subr.mxu0 %v3020_v0 }
 0x984   :  { %2781 = vmatpush3.msra.mxu0 %v1863_v24 }
 0x985   :  { %2782 = vmatprep.subr.mxu0 %v3020_v0 }
 0x986   :  { %2783 = vmatpush3.msra.mxu0 %v1862_v25 }
 0x987   :  { %2784 = vmatprep.subr.mxu0 %v3020_v0 }
 0x988   :  { %2785 = vmatpush3.msra.mxu0 %v1861_v26 }
 0x989   :  { %2786 = vmatprep.subr.mxu0 %v3020_v0 }
 0x98a   :  { %2787 = vmatpush3.msra.mxu0 %v1860_v27 }
 0x98b   :  { %2788 = vmatprep.subr.mxu0 %v3020_v0 }
 0x98c   :  { %2789 = vmatpush3.msra.mxu0 %v1859_v28 }
 0x98d   :  { %2790 = vmatprep.subr.mxu0 %v3020_v0 }
 0x98e   :  { %2791 = vmatpush3.msra.mxu0 %v1858_v18 }
 0x98f   :  { %2792 = vmatprep.subr.mxu0 %v3020_v0 }
 0x990   :  { %2793 = vmatpush3.msra.mxu0 %v1857_v30 }
 0x991   :  { %2794 = vmatprep.subr.mxu0 %v3020_v0 }
 0x992   :  { %2795 = vmatpush3.msra.mxu0 %v1856_v31 }
 0x993   :  { %2796 = vmatprep.subr.mxu0 %v3020_v0 }
 0x994   :  { %2797 = vmatpush3.msra.mxu0 %v1855_v32 }
 0x995   :  { %2798 = vmatprep.subr.mxu0 %v3020_v0 }
 0x996   :  { %2799 = vmatpush3.msra.mxu0 %v1854_v34 }
 0xa41   :  { %v1743_v40 = vpop.f32.mrf.mxu1 }
 0xa42   :  { %v3494_v41 = vadd.f32 %v2203_v37, %v1743_v40 }
 0xa43   :  { %v2767_v43 = vpop.f32.mrf.mxu1 }
 0xa44   :  { %v1750_v46 = vand.u32 2139095040, %v3494_v41  ;;  %v1747_v54 = vand.u32 2147483647, %v3494_v41  ;;  %vm1749_vm8 = vcmp.lt.s32.totalorder %v3494_v41, 0  ;;  %vm1839_vm13 = vweird.f32 %v3494_v41 }
 0xa46   :  { %v1751_v47 = vshrl.u32 %v1750_v46, 23  ;;  %v1754_v63 = vand.u32 8388607, %v1747_v54  ;;  %vm1748_vm9 = vcmp.le.f32.partialorder %v1747_v54, 0.7853982 }
 0xa48   :  { %v2204_v48 = vadd.s32 4294967169, %v1751_v47  ;;  %v1755_v44 = vor.u32 8388608, %v1754_v63 }
 0xa4a   :  { %v1757_v53 = vadd.s32 1, %v2204_v48  ;;  %v1795_v17 = vshll.u32 %v1755_v44, 8 }
 0xa4c   :  { %vm1758_vm0 = vcmp.gt.s32.totalorder %v1757_v53, 0 }
 0xa4d   :  { %v1759_v58 = vsel %vm1758_vm0, %v1757_v53, 0 }
 0xa4e   :  { %v1761_v60 = vand.u32 31, %v1759_v58  ;;  %v1760_v2 = vshrl.u32 %v1759_v58, 5 }
 0xa50   :  { %v1762_v1 = vsub.s32 32, %v1761_v60  ;;  %v1764_v35 = vshll.u32 %v3025_v57, %v1761_v60  ;;  %v1767_v4 = vshll.u32 %v3026_v59, %v1761_v60  ;;  %v1770_v7 = vshll.u32 %v3027_v62, %v1761_v60 }
 0xa51   :  { %v1773_v39 = vshll.u32 %v3022_v49, %v1761_v60  ;;  %v1776_v45 = vshll.u32 %v3023_v51, %v1761_v60  ;;  %vm1779_vm2 = vcmp.lt.s32.totalorder %v1760_v2, 1  ;;  %vm1782_vm3 = vcmp.lt.s32.totalorder %v1760_v2, 4 }
 0xa52   :  { %v1765_v5 = vshrl.u32 %v3026_v59, %v1762_v1  ;;  %v1768_v6 = vshrl.u32 %v3027_v62, %v1762_v1  ;;  %v1771_v8 = vshrl.u32 %v3022_v49, %v1762_v1  ;;  %v1774_v9 = vshrl.u32 %v3023_v51, %v1762_v1 }
 0xa53   :  { %v1777_v29 = vshrl.u32 %v3024_v55, %v1762_v1  ;;  %v1763_v36 = vshrl.u32 %v3025_v57, %v1762_v1  ;;  %vm1781_vm4 = vcmp.lt.s32.totalorder %v1760_v2, 3  ;;  %vm1780_vm5 = vcmp.lt.s32.totalorder %v1760_v2, 2 }
 0xa54   :  { %v1766_v10 = vor.u32 %v1765_v5, %v1764_v35  ;;  %v1769_v11 = vor.u32 %v1768_v6, %v1767_v4  ;;  %v1772_v12 = vor.u32 %v1771_v8, %v1770_v7  ;;  %v1775_v50 = vor.u32 %v1774_v9, %v1773_v39 }
 0xa55   :  { %v1778_v13 = vor.u32 %v1777_v29, %v1776_v45 }
 0xa56   :  { %v1784_v14 = vsel %vm1782_vm3, %v1772_v12, 2102212464  ;;  %v1787_v15 = vsel %vm1779_vm2, %v1766_v10, %v1769_v11  ;;  %v1791_v33 = vsel %vm1779_vm2, %v1769_v11, %v1772_v12  ;;  %v1788_v61 = vsel %vm1782_vm3, %v1775_v50, 920167782 }
 0xa57   :  { %v1792_v16 = vsel %vm1782_vm3, %v1778_v13, 1326507024  ;;  %v1789_v38 = vsel %vm1781_vm4, %v1772_v12, %v1788_v61  ;;  %v1783_v42 = vsel %vm1779_vm2, %v1763_v36, %v1766_v10  ;;  %v1785_v19 = vsel %vm1781_vm4, %v1769_v11, %v1784_v14 }
 0xa58   :  { %v1793_v3 = vsel %vm1781_vm4, %v1775_v50, %v1792_v16  ;;  %v1790_v20 = vsel %vm1780_vm5, %v1787_v15, %v1789_v38  ;;  %v1786_v24 = vsel %vm1780_vm5, %v1783_v42, %v1785_v19  ;;  %v2070_v16 = vld [vmem:[#allocation5 + $0x5f8] sm:$0xff]  ;;  %v2069_v38 = vld [vmem:[#allocation5 + $0x5f0] sm:$0xff] }
 0xa59   :  { %v1794_v21 = vsel %vm1780_vm5, %v1791_v33, %v1793_v3  ;;  %v3514_v56 = vmul.u32.u64.low %v1795_v17, %v1790_v20  ;;  %v3515_v52 = vmul.u32.u64.high %v1795_v17, %v1790_v20, %v3514_v56  ;;  %v1802_v26 = vmul.u32 %v1795_v17, %v1786_v24  ;;  %2804 = vmatpush3.msra.mxu1 %v2070_v16  ;;  %v2068_v3 = vld [vmem:[#allocation5 + $0x5e8] sm:$0xff]  ;;  %v2066_v42 = vld [vmem:[#allocation5 + $0x5d8] sm:$0xff]  ;;  %v2065_v19 = vld [vmem:[#allocation5 + $0x5d0] sm:$0xff] }
 0xa5a   :  { %v3511_v22 = vmul.u32.u64.low %v1795_v17, %v1794_v21  ;;  %v3512_v23 = vmul.u32.u64.high %v1795_v17, %v1794_v21, %v3511_v22  ;;  %2805 = vmatprep.subr.mxu1 %v3020_v0  ;;  %v2067_v17 = vld [vmem:[#allocation5 + $0x5e0] sm:$0xff]  ;;  %v2062_v21 = vld [vmem:[#allocation5 + $0x5b8] sm:$0xff]  ;;  %v2057_v24 = vld [vmem:[#allocation5 + $0x590] sm:$0xff] }
 0xa5b   :  { %v1805_v25 = vadd.s32 1, %v3515_v52  ;;  %2806 = vmatpush3.msra.mxu1 %v2069_v38  ;;  %v2063_v20 = vld [vmem:[#allocation5 + $0x5c0] sm:$0xff]  ;;  %v2061_v22 = vld [vmem:[#allocation5 + $0x5b0] sm:$0xff] }
 0xa5c   :  { %vm1804_vm6 = vc.u32 %v3512_v23, %v3514_v56  ;;  %v1803_v47 = vadd.s32 %v3514_v56, %v3512_v23  ;;  %2807 = vmatprep.subr.mxu1 %v3020_v0  ;;  %v2060_v23 = vld [vmem:[#allocation5 + $0x5a8] sm:$0xff]  ;;  %v2059_v56 = vld [vmem:[#allocation5 + $0x5a0] sm:$0xff] }
 0xa5d   :  { %v1806_v27 = vsel %vm1804_vm6, %v1805_v25, %v3515_v52  ;;  %2808 = vmatpush3.msra.mxu1 %v2068_v3  ;;  %v2058_v52 = vld [vmem:[#allocation5 + $0x598] sm:$0xff]  ;;  %v2056_v25 = vld [vmem:[#allocation5 + $0x588] sm:$0xff] }
 0xa5e   :  { %v1807_v28 = vadd.s32 %v1806_v27, %v1802_v26  ;;  %2809 = vmatprep.subr.mxu1 %v3020_v0  ;;  %v2055_v26 = vld [vmem:[#allocation5 + $0x580] sm:$0xff]  ;;  %v2208_v27 = vld [vmem:[#allocation7 + $0xa] ss:$0 sm:$0xff] }
 0xa5f   :  { %2810 = vmatpush3.msra.mxu1 %v2067_v17 }
 0xa60   :  { %v1808_v18 = vadd.s32 536870912, %v1807_v28  ;;  %2811 = vmatprep.subr.mxu1 %v3020_v0 }
 0xa61   :  { %2812 = vmatpush3.msra.mxu1 %v2066_v42 }
 0xa62   :  { %v1809_v30 = vshrl.u32 %v1808_v18, 30  ;;  %2813 = vmatprep.subr.mxu1 %v3020_v0 }
 0xa63   :  { %2814 = vmatpush3.msra.mxu1 %v2065_v19 }
 0xa64   :  { %v1810_v31 = vshll.u32 %v1809_v30, 30  ;;  %v1833_v8 = vsub.s32 4, %v1809_v30  ;;  %2815 = vmatprep.subr.mxu1 %v3020_v0 }
 0xa66   :  { %v1811_v32 = vsub.s32 %v1807_v28, %v1810_v31  ;;  %v1834_v45 = vsel %vm1749_vm8, %v1833_v8, %v1809_v30 }
 0xa67   :  { %v1836_v29 = vsel %vm1748_vm9, 0, %v1834_v45 }
 0xa68   :  { %v1813_v34 = vsub.s32 0, %v1811_v32  ;;  %v1840_v44 = vadd.s32 3, %v1836_v29 }
 0xa6a   :  { %v2205_v37 = vmin.u32 %v1813_v34, %v1811_v32  ;;  %v1841_v10 = vand.u32 3, %v1840_v44 }
 0xa6c   :  { %v1815_v40 = vclz %v2205_v37  ;;  %vm1846_vm10 = vcmp.eq.s32.totalorder %v1841_v10, 2  ;;  %vm1843_vm11 = vcmp.eq.s32.totalorder %v1841_v10, 0  ;;  %vm1842_vm12 = vcmp.lt.s32.totalorder %v1841_v10, 2 }
 0xa6e   :  { %v2206_v43 = vadd.s32 4294967294, %v1815_v40 }
 0xa70   :  { %vm2207_vm7 = vcmp.lt.s32.totalorder %v2206_v43, 0 }
 0xa71   :  { %v1818_v46 = vsel %vm2207_vm7, 0, %v2206_v43 }
 0xa72   :  { %v1819_v48 = vsub.s32 32, %v1818_v46  ;;  %v1823_v53 = vsub.s32 4294967266, %v1818_v46  ;;  %v1820_v58 = vshll.u32 %v1811_v32, %v1818_v46 }
 0xa74   :  { %v1821_v60 = vshrl.u32 %v1803_v47, %v1819_v48  ;;  %v1824_v63 = vadd.s32 127, %v1823_v53 }
 0xa76   :  { %v1822_v1 = vor.u32 %v1821_v60, %v1820_v58  ;;  %v1825_v2 = vshll.u32 %v1824_v63, 23 }
 0xa78   :  { %v1826_v35 = vor.u32 4788187, %v1825_v2  ;;  %v1829_v5 = vcvt.s32.f32 %v1822_v1 }
 0xa7a   :  { %v1827_v4 = vand.u32 2147483647, %v1826_v35 }
 0xa7c   :  { %v1830_v6 = vmul.f32 %v1829_v5, %v1827_v4 }
 0xa7e   :  { %v1831_v7 = vxor.u32 2147483648, %v1830_v6 }
 0xa80   :  { %v1832_v39 = vsel %vm1749_vm8, %v1831_v7, %v1830_v6 }
 0xa81   :  { %v1835_v9 = vsel %vm1748_vm9, %v3494_v41, %v1832_v39 }
 0xa82   :  { %2918 = vcosq.f32 %v1835_v9 }
 0xa83   :  { %2920 = vsinq.f32 %v1835_v9 }
 0xa8f   :  { %v2919_v11 = vpop.eup %2918 }
 0xa90   :  { %v2921_v12 = vpop.eup %2920  ;;  %v1847_v50 = vxor.u32 2147483648, %v2919_v11 }
 0xa91   :  { %v1844_v13 = vxor.u32 2147483648, %v2921_v12 }
 0xa92   :  { %v1848_v14 = vsel %vm1846_vm10, %v1847_v50, %v2921_v12 }
 0xa93   :  { %v1845_v15 = vsel %vm1843_vm11, %v2919_v11, %v1844_v13 }
 0xa94   :  { %v1849_v54 = vsel %vm1842_vm12, %v1845_v15, %v1848_v14 }
 0xa95   :  { %v1850_v33 = vsel %vm1839_vm13, nan, %v1849_v54 }
 0xa96   :  { %v1851_v36 = vmul.f32 %v1850_v33, %v1850_v33 }
 0xa98   :  { %v1852_v61 = vadd.f32 %v1851_v36, %v3494_v41  ;;  %v2064_v41 = vld [vmem:[#allocation5 + $0x5c8] sm:$0xff] }
 0xa99   :  { %2816 = vmatpush3.msra.mxu1 %v2064_v41 }
 0xa9a   :  { %2801 = vmatmul.mubr.f32.vlgmr.msra.gmra.mxu0 %v1852_v61  ;;  %2817 = vmatprep.subr.mxu1 %v3020_v0 }
 0xa9b   :  { %2818 = vmatpush3.msra.mxu1 %v2063_v20 }
 0xa9c   :  { %2819 = vmatprep.subr.mxu1 %v3020_v0 }
 0xa9d   :  { %2820 = vmatpush3.msra.mxu1 %v2062_v21 }
 0xa9e   :  { %2821 = vmatprep.subr.mxu1 %v3020_v0 }
 0xa9f   :  { %2822 = vmatpush3.msra.mxu1 %v2061_v22 }
 0xaa0   :  { %2823 = vmatprep.subr.mxu1 %v3020_v0 }
 0xaa1   :  { %2824 = vmatpush3.msra.mxu1 %v2060_v23 }
 0xaa2   :  { %2825 = vmatprep.subr.mxu1 %v3020_v0 }
 0xaa3   :  { %2826 = vmatpush3.msra.mxu1 %v2059_v56 }
 0xaa4   :  { %2827 = vmatprep.subr.mxu1 %v3020_v0 }
 0xaa5   :  { %2828 = vmatpush3.msra.mxu1 %v2058_v52 }
 0xaa6   :  { %2829 = vmatprep.subr.mxu1 %v3020_v0 }
 0xaa7   :  { %2830 = vmatpush3.msra.mxu1 %v2057_v24 }
 0xaa8   :  { %2831 = vmatprep.subr.mxu1 %v3020_v0 }
 0xaa9   :  { %2832 = vmatpush3.msra.mxu1 %v2056_v25 }
 0xaaa   :  { %2833 = vmatprep.subr.mxu1 %v3020_v0 }
 0xaab   :  { %2834 = vmatpush3.msra.mxu1 %v2055_v26 }
 0xb5a   :  { %v1944_v28 = vpop.f32.mrf.mxu0 }
 0xb5b   :  { %v3542_v18 = vadd.f32 %v2208_v27, %v1944_v28 }
 0xb5c   :  { %v2802_v30 = vpop.f32.mrf.mxu0 }
 0xb5d   :  { %v1951_v31 = vand.u32 2139095040, %v3542_v18  ;;  %v1948_v40 = vand.u32 2147483647, %v3542_v18  ;;  %vm1950_vm5 = vcmp.lt.s32.totalorder %v3542_v18, 0  ;;  %vm2040_vm10 = vweird.f32 %v3542_v18 }
 0xb5f   :  { %v1952_v32 = vshrl.u32 %v1951_v31, 23  ;;  %v1955_v47 = vand.u32 8388607, %v1948_v40  ;;  %vm1949_vm6 = vcmp.le.f32.partialorder %v1948_v40, 0.7853982 }
 0xb61   :  { %v2209_v34 = vadd.s32 4294967169, %v1952_v32  ;;  %v1956_v7 = vor.u32 8388608, %v1955_v47 }
 0xb63   :  { %v1958_v37 = vadd.s32 1, %v2209_v34 }
 0xb65   :  { %vm1959_vm14 = vcmp.gt.s32.totalorder %v1958_v37, 0 }
 0xb66   :  { %v1960_v43 = vsel %vm1959_vm14, %v1958_v37, 0 }
 0xb67   :  { %v1962_v46 = vand.u32 31, %v1960_v43  ;;  %v1961_v48 = vshrl.u32 %v1960_v43, 5 }
 0xb69   :  { %v1963_v0 = vsub.s32 32, %v1962_v46  ;;  %v1965_v53 = vshll.u32 %v3025_v57, %v1962_v46  ;;  %v1968_v58 = vshll.u32 %v3026_v59, %v1962_v46  ;;  %v1971_v1 = vshll.u32 %v3027_v62, %v1962_v46 }
 0xb6a   :  { %v1974_v35 = vshll.u32 %v3022_v49, %v1962_v46  ;;  %v1977_v5 = vshll.u32 %v3023_v51, %v1962_v46  ;;  %vm1980_vm15 = vcmp.lt.s32.totalorder %v1961_v48, 1  ;;  %vm1983_vm1 = vcmp.lt.s32.totalorder %v1961_v48, 4 }
 0xb6b   :  { %v1966_v60 = vshrl.u32 %v3026_v59, %v1963_v0  ;;  %v1969_v63 = vshrl.u32 %v3027_v62, %v1963_v0  ;;  %v1972_v2 = vshrl.u32 %v3022_v49, %v1963_v0  ;;  %v1975_v4 = vshrl.u32 %v3023_v51, %v1963_v0 }
 0xb6c   :  { %v1978_v6 = vshrl.u32 %v3024_v55, %v1963_v0  ;;  %v1964_v10 = vshrl.u32 %v3025_v57, %v1963_v0  ;;  %vm1982_vm0 = vcmp.lt.s32.totalorder %v1961_v48, 3  ;;  %vm1981_vm2 = vcmp.lt.s32.totalorder %v1961_v48, 2 }
 0xb6d   :  { %v1967_v8 = vor.u32 %v1966_v60, %v1965_v53  ;;  %v1970_v39 = vor.u32 %v1969_v63, %v1968_v58  ;;  %v1973_v9 = vor.u32 %v1972_v2, %v1971_v1  ;;  %v1976_v45 = vor.u32 %v1975_v4, %v1974_v35 }
 0xb6e   :  { %v1979_v59 = vor.u32 %v1978_v6, %v1977_v5  ;;  %v1996_v55 = vshll.u32 %v1956_v7, 8 }
 0xb6f   :  { %v1985_v29 = vsel %vm1983_vm1, %v1973_v9, 2102212464  ;;  %v1988_v62 = vsel %vm1980_vm15, %v1967_v8, %v1970_v39  ;;  %v1992_v44 = vsel %vm1980_vm15, %v1970_v39, %v1973_v9  ;;  %v1989_v49 = vsel %vm1983_vm1, %v1976_v45, 920167782 }
 0xb70   :  { %v1993_v11 = vsel %vm1983_vm1, %v1979_v59, 1326507024  ;;  %v1990_v51 = vsel %vm1982_vm0, %v1973_v9, %v1989_v49  ;;  %v1984_v50 = vsel %vm1980_vm15, %v1964_v10, %v1967_v8  ;;  %v1986_v13 = vsel %vm1982_vm0, %v1970_v39, %v1985_v29 }
 0xb71   :  { %v1994_v12 = vsel %vm1982_vm0, %v1976_v45, %v1993_v11  ;;  %v1991_v14 = vsel %vm1981_vm2, %v1988_v62, %v1990_v51  ;;  %v1987_v16 = vsel %vm1981_vm2, %v1984_v50, %v1986_v13  ;;  %v2213_v45 = vld [vmem:[#allocation7 + $0xb] ss:$0 sm:$0xff] }
 0xb72   :  { %v1995_v15 = vsel %vm1981_vm2, %v1992_v44, %v1994_v12  ;;  %v3562_v36 = vmul.u32.u64.low %v1996_v55, %v1991_v14  ;;  %v3563_v61 = vmul.u32.u64.high %v1996_v55, %v1991_v14, %v3562_v36  ;;  %v2003_v38 = vmul.u32 %v1996_v55, %v1987_v16 }
 0xb73   :  { %v3559_v54 = vmul.u32.u64.low %v1996_v55, %v1995_v15  ;;  %v3560_v33 = vmul.u32.u64.high %v1996_v55, %v1995_v15, %v3559_v54 }
 0xb74   :  { %v2006_v57 = vadd.s32 1, %v3563_v61 }
 0xb75   :  { %vm2005_vm3 = vc.u32 %v3560_v33, %v3562_v36  ;;  %v2004_v24 = vadd.s32 %v3562_v36, %v3560_v33 }
 0xb76   :  { %v2007_v3 = vsel %vm2005_vm3, %v2006_v57, %v3563_v61 }
 0xb77   :  { %v2008_v17 = vadd.s32 %v2007_v3, %v2003_v38 }
 0xb79   :  { %v2009_v42 = vadd.s32 536870912, %v2008_v17 }
 0xb7b   :  { %v2010_v19 = vshrl.u32 %v2009_v42, 30 }
 0xb7d   :  { %v2011_v41 = vshll.u32 %v2010_v19, 30  ;;  %v2034_v0 = vsub.s32 4, %v2010_v19 }
 0xb7f   :  { %v2012_v20 = vsub.s32 %v2008_v17, %v2011_v41  ;;  %v2035_v58 = vsel %vm1950_vm5, %v2034_v0, %v2010_v19 }
 0xb80   :  { %v2037_v60 = vsel %vm1949_vm6, 0, %v2035_v58 }
 0xb81   :  { %v2014_v21 = vsub.s32 0, %v2012_v20  ;;  %v2041_v63 = vadd.s32 3, %v2037_v60 }
 0xb83   :  { %v2210_v22 = vmin.u32 %v2014_v21, %v2012_v20  ;;  %v2042_v1 = vand.u32 3, %v2041_v63 }
 0xb85   :  { %v2016_v23 = vclz %v2210_v22  ;;  %vm2047_vm7 = vcmp.eq.s32.totalorder %v2042_v1, 2  ;;  %vm2044_vm8 = vcmp.eq.s32.totalorder %v2042_v1, 0  ;;  %vm2043_vm9 = vcmp.lt.s32.totalorder %v2042_v1, 2 }
 0xb87   :  { %v2211_v56 = vadd.s32 4294967294, %v2016_v23 }
 0xb89   :  { %vm2212_vm4 = vcmp.lt.s32.totalorder %v2211_v56, 0 }
 0xb8a   :  { %v2019_v52 = vsel %vm2212_vm4, 0, %v2211_v56 }
 0xb8b   :  { %v2020_v25 = vsub.s32 32, %v2019_v52  ;;  %v2024_v26 = vsub.s32 4294967266, %v2019_v52  ;;  %v2021_v27 = vshll.u32 %v2012_v20, %v2019_v52 }
 0xb8d   :  { %v2022_v28 = vshrl.u32 %v2004_v24, %v2020_v25  ;;  %v2025_v30 = vadd.s32 127, %v2024_v26 }
 0xb8f   :  { %v2023_v31 = vor.u32 %v2022_v28, %v2021_v27  ;;  %v2026_v32 = vshll.u32 %v2025_v30, 23 }
 0xb91   :  { %v2027_v34 = vor.u32 4788187, %v2026_v32  ;;  %v2030_v43 = vcvt.s32.f32 %v2023_v31 }
 0xb93   :  { %v2028_v37 = vand.u32 2147483647, %v2027_v34 }
 0xb95   :  { %v2031_v46 = vmul.f32 %v2030_v43, %v2028_v37 }
 0xb97   :  { %v2032_v47 = vxor.u32 2147483648, %v2031_v46 }
 0xb99   :  { %v2033_v48 = vsel %vm1950_vm5, %v2032_v47, %v2031_v46 }
 0xb9a   :  { %v2036_v53 = vsel %vm1949_vm6, %v3542_v18, %v2033_v48 }
 0xb9b   :  { %2922 = vcosq.f32 %v2036_v53 }
 0xb9c   :  { %2924 = vsinq.f32 %v2036_v53 }
 0xba8   :  { %v2923_v2 = vpop.eup %2922 }
 0xba9   :  { %v2925_v35 = vpop.eup %2924  ;;  %v2048_v4 = vxor.u32 2147483648, %v2923_v2 }
 0xbaa   :  { %v2045_v5 = vxor.u32 2147483648, %v2925_v35 }
 0xbab   :  { %v2049_v6 = vsel %vm2047_vm7, %v2048_v4, %v2925_v35 }
 0xbac   :  { %v2046_v7 = vsel %vm2044_vm8, %v2923_v2, %v2045_v5 }
 0xbad   :  { %v2050_v40 = vsel %vm2043_vm9, %v2046_v7, %v2049_v6 }
 0xbae   :  { %v2051_v8 = vsel %vm2040_vm10, nan, %v2050_v40 }
 0xbaf   :  { %v2052_v39 = vmul.f32 %v2051_v8, %v2051_v8 }
 0xbb1   :  { %v2053_v9 = vadd.f32 %v2052_v39, %v3542_v18 }
 0xbb3   :  { %2836 = vmatmul.mubr.f32.vlgmr.msra.gmra.mxu1 %v2053_v9 }
 0xc73   :  { %v2145_v59 = vpop.f32.mrf.mxu1 }
 0xc74   :  { %v2146_v29 = vadd.f32 %v2213_v45, %v2145_v59 }
 0xc75   :  { %v2837_v62 = vpop.f32.mrf.mxu1 }
 0xc76   :  { %2149 = vst [vmem:[#allocation8] sm:$0xff] %v2146_v29 }
 0xc77   :  { %2998 = shalt.err (!%p2995_p5)
}
 0xc78   :  { %2159 = dma.vmem_to_hbm [thread:$0]  %s2157_s2, 128, %s3581_s3, [#allocation4]  }
 0xc79   :  { %3011 = dma.done.wait [#allocation4], 128  }
 0xc7a   :  { %3012 = vsyncadd [#allocation4], 4294967168 }
 0xc7b   :  { %2163 = vsyncpa [#allocation3], 1 }
 0xc7c   :  { %2164 = vsyncpa [#allocation6], 1 }
 0xc7d   :  { %2165 = vsyncpa [#allocation4], 1 }

</bundles_post_ra>
